<compile_context>
chip_gen: v6e
topology: v6e:2x2x1
jax: 0.10.0
libtpu: 0.0.40
codegen_flags: <defaults>
</compile_context>

<pallas_src>
import functools

import jax
import jax.numpy as jnp
from jax.experimental import pallas as pl
from jax.experimental.pallas import tpu as pltpu


def _layer_norm(x, gamma, beta, eps=1e-5):
    # PyTorch nn.LayerNorm over last dim, biased variance.  One fused statistics pass
    # (sum and sum-of-squares); f32 in, f32 out.  (One-pass variance is clamped at 0.)
    inv_d = 1.0 / x.shape[-1]
    s1 = jnp.sum(x, axis=-1, keepdims=True)
    s2 = jnp.sum(x * x, axis=-1, keepdims=True)
    mean = s1 * inv_d
    var = jnp.maximum(s2 * inv_d - mean * mean, 0.0)
    return (x - mean) * jax.lax.rsqrt(var + eps) * gamma + beta


def transformer_layer_kernel(seq_ref,
                             wq_ref, bq_ref, wkT_ref, bkT_ref, wv_ref, bv_ref,
                             g1_ref, be1_ref,
                             w1_ref, b1_ref, w2_ref, b2_ref,
                             g2_ref, be2_ref,
                             out_ref,
                             kT_ref, v_ref, ctx_ref,
                             *, n_heads, d_k, q_tile, kv_chunk):
    qi = pl.program_id(1)
    cdt = seq_ref.dtype                 # MXU operand dtype follows the activations
    seq_len = seq_ref.shape[0]
    n_kv_chunks = seq_len // kv_chunk
    scale = 1.0 / (d_k ** 0.5)

    # ---- K/V projections: once per batch (first q-tile), kept resident in VMEM scratch ----
    @pl.when(qi == 0)
    def _():
        def project_chunk(start, rows):
            x_c = seq_ref[pl.ds(start, rows), :]                               # (rows, D)
            # K^T = Wk^T @ x^T (+ bk^T): produced directly in (D, rows) layout, so the
            # (H, d_k, rows) view is a free leading-dim reshape (lane dim = seq position).
            k_t = (jnp.dot(wkT_ref[...], x_c.T, preferred_element_type=jnp.float32)
                   + bkT_ref[...]).astype(cdt)                                 # (D, rows)
            v_c = (jnp.dot(x_c, wv_ref[...], preferred_element_type=jnp.float32)
                   + bv_ref[...]).astype(cdt)                                  # (rows, D)
            return k_t.reshape(n_heads, d_k, rows), v_c

        if n_kv_chunks == 1:
            k_t, v_c = project_chunk(0, seq_len)
            kT_ref[...] = k_t
            v_ref[...] = v_c
        else:
            # Chunked projection (lane-aligned chunks only): caps f32 transients at
            # O(chunk*D) and breaks up the un-pipelined bubble at the first q-tile.
            def body(c, carry):
                start = pl.multiple_of(c * kv_chunk, kv_chunk)
                k_t, v_c = project_chunk(start, kv_chunk)
                kT_ref[:, :, pl.ds(start, kv_chunk)] = k_t
                v_ref[pl.ds(start, kv_chunk), :] = v_c
                return carry
            jax.lax.fori_loop(0, n_kv_chunks, body, 0)

    # ---- Q projection for this row tile (sliced out of the resident seq block) ----
    row0 = pl.multiple_of(qi * q_tile, q_tile)
    x_q = seq_ref[pl.ds(row0, q_tile), :]                                      # (TQ, D)
    q = jnp.dot(x_q, wq_ref[...], preferred_element_type=jnp.float32) + bq_ref[...]
    # fold 1/sqrt(d_k) into Q: O(TQ*D) instead of O(H*TQ*L)
    qh = jnp.transpose((q * scale).astype(cdt).reshape(q_tile, n_heads, d_k),
                       (1, 0, 2))                                              # (H, TQ, d_k)

    # ---- attention scores, all heads batched; K stored transposed -> MXU-native QK^T ----
    s = jnp.einsum('hqd,hdk->hqk', qh, kT_ref[...],
                   preferred_element_type=jnp.float32)                         # (H, TQ, L) f32
    # per-row shift is equivalent to the reference's global-max shift (shift invariance)
    s = s - jnp.max(s, axis=-1, keepdims=True)
    e = jnp.exp(s)                                                             # f32 (v5e-safe)
    p = (e * pl.reciprocal(jnp.sum(e, axis=-1, keepdims=True), approx=True)).astype(cdt)

    # ---- PV: each head's result written straight to lane offset h*d_k of a (TQ, D) f32
    #      scratch (no (H,TQ,d_k)->(TQ,D) transpose / relayout); V is packed (L, D) ----
    for h in range(n_heads):                                                   # static loop
        ctx_ref[:, h * d_k:(h + 1) * d_k] = jnp.dot(
            p[h], v_ref[:, h * d_k:(h + 1) * d_k], preferred_element_type=jnp.float32)

    # ---- residual + layer norm 1 (f32) ----
    ctx = _layer_norm(ctx_ref[...] + x_q.astype(jnp.float32), g1_ref[...], be1_ref[...])

    # ---- position-wise feed-forward on the (TQ, D) row tile ----
    hid = jnp.dot(ctx.astype(w1_ref.dtype), w1_ref[...],
                  preferred_element_type=jnp.float32) + b1_ref[...]            # (TQ, d_ff)
    hid = jnp.maximum(hid, 0.0)
    ff = jnp.dot(hid.astype(w2_ref.dtype), w2_ref[...],
                 preferred_element_type=jnp.float32) + b2_ref[...]             # (TQ, D)

    # ---- residual + layer norm 2 ----
    out_ref[...] = _layer_norm(ff + ctx, g2_ref[...], be2_ref[...]).astype(out_ref.dtype)


def _default_vmem_limit_bytes():
    # Explicit scoped-VMEM budget: ~3/4 of physical (128 MiB v5e/v6e, 64 MiB/TC v7x), capped.
    try:
        cap = int(pltpu.get_tpu_info().vmem_capacity_bytes)
    except Exception:
        cap = 64 * 1024 * 1024
    return min((cap * 3) // 4, 100 * 1024 * 1024)


def _pick_q_tile(seq_len, n_heads, d_model, d_ff, itemsize, vmem_budget):
    # Largest MXU-friendly row tile whose f32 intermediates fit under the VMEM budget.
    candidates = [t for t in (256, 128, 64, 32, 16, 8) if seq_len % t == 0]
    if not candidates:
        return seq_len
    resident = (3 * seq_len * d_model * itemsize                       # seq block + K^T + V
                + (3 * d_model * d_model + 2 * d_model * d_ff) * itemsize)  # single-buffered weights
    for t in candidates:
        per_tile = (3 * n_heads * t * seq_len * 4                      # scores / exp / probs (f32)
                    + t * d_ff * 4                                     # FFN hidden (f32)
                    + 8 * t * d_model * 4)                             # q/ctx/ff/residual temps
        if resident + per_tile <= vmem_budget:
            return t
    return candidates[-1]


def transformer_layer(seq, params, *, n_heads, q_tile=None):
    B, L, D = seq.shape
    d_ff = params["w1"].shape[1]
    d_k = D // n_heads
    assert n_heads * d_k == D

    vmem_limit = _default_vmem_limit_bytes()
    if q_tile is None:
        q_tile = _pick_q_tile(L, n_heads, D, d_ff, seq.dtype.itemsize, int(vmem_limit * 0.85))
    assert L % q_tile == 0
    n_qt = L // q_tile

    # Chunk the per-batch K/V projection only when the chunk offsets stay 128-lane-aligned.
    kv_chunk = q_tile if (n_qt > 1 and q_tile % 128 == 0) else L

    # MXU operands follow the activation dtype (bf16 activations -> bf16 MXU path).
    # Biases / layernorm params stay in their own (f32) dtype: they feed f32 accumulators.
    mxu = seq.dtype
    wq = params["wq"].astype(mxu)
    wkT = params["wk"].T.astype(mxu)        # pre-transposed so K^T is produced MXU-natively
    wv = params["wv"].astype(mxu)
    w1 = params["w1"].astype(mxu)
    w2 = params["w2"].astype(mxu)
    bkT = params["bk"].reshape(D, 1)

    kernel = functools.partial(transformer_layer_kernel, n_heads=n_heads, d_k=d_k,
                               q_tile=q_tile, kv_chunk=kv_chunk)

    itemsize = seq.dtype.itemsize
    cost = pl.CostEstimate(
        flops=int(2 * B * L * (3 * D * D + 2 * L * D + 2 * D * d_ff)),
        transcendentals=int(B * n_heads * L * L),
        bytes_accessed=int((2 * B * L * D + 3 * D * D + 2 * D * d_ff + 8 * D + 2 * d_ff)
                           * itemsize),
    )

    def run(single_buffer_params):
        def const(shape):
            index_map = lambda b, qi: tuple(0 for _ in shape)
            if single_buffer_params:
                # Constant blocks never change across the grid: single-buffer them.
                return pl.BlockSpec(shape, index_map, pipeline_mode=pl.Buffered(1))
            return pl.BlockSpec(shape, index_map)

        return pl.pallas_call(
            kernel,
            out_shape=jax.ShapeDtypeStruct((B, L, D), seq.dtype),
            grid_spec=pltpu.PrefetchScalarGridSpec(
                num_scalar_prefetch=0,
                grid=(B, n_qt),
                in_specs=[
                    # Single sequence input: full (L, D) per batch; q tiles sliced in-kernel.
                    pl.BlockSpec((None, L, D), lambda b, qi: (b, 0, 0)),
                    const((D, D)), const((1, D)),        # q_linear
                    const((D, D)), const((D, 1)),        # k_linear (transposed weight / bias)
                    const((D, D)), const((1, D)),        # v_linear
                    const((1, D)), const((1, D)),        # layer_norm1
                    const((D, d_ff)), const((1, d_ff)),  # linear1
                    const((d_ff, D)), const((1, D)),     # linear2
                    const((1, D)), const((1, D)),        # layer_norm2
                ],
                out_specs=pl.BlockSpec((None, q_tile, D), lambda b, qi: (b, qi, 0)),
                scratch_shapes=[
                    pltpu.VMEM((n_heads, d_k, L), seq.dtype),  # K^T heads (lane = L, dense)
                    pltpu.VMEM((L, D), seq.dtype),             # V packed (no d_k lane padding)
                    pltpu.VMEM((q_tile, D), jnp.float32),      # attention context accumulator
                ],
            ),
            compiler_params=pltpu.CompilerParams(
                dimension_semantics=("parallel", "arbitrary"),
                vmem_limit_bytes=vmem_limit,
            ),
            cost_estimate=cost,
        )(seq,
          wq, params["bq"], wkT, bkT, wv, params["bv"],
          params["g1"], params["be1"],
          w1, params["b1"], w2, params["b2"],
          params["g2"], params["be2"])

    try:
        return run(True)
    except Exception:
        # Fallback for jax versions that reject pipeline_mode=pl.Buffered(1) single-buffering
        # of constant operands; everything else is identical.
        return run(False)


# ----------------------- plain-JAX reference for verification -----------------------
def reference_forward(seq, params, *, n_heads):
    B, L, D = seq.shape
    d_k = D // n_heads

    def proj(x, w, b):
        return x @ w + b[0]

    q = proj(seq, params["wq"], params["bq"]).reshape(B, L, n_heads, d_k).transpose(0, 2, 1, 3)
    k = proj(seq, params["wk"], params["bk"]).reshape(B, L, n_heads, d_k).transpose(0, 2, 1, 3)
    v = proj(seq, params["wv"], params["bv"]).reshape(B, L, n_heads, d_k).transpose(0, 2, 1, 3)
    scores = jnp.einsum("bhqd,bhkd->bhqk", q, k) / (d_k ** 0.5)
    scores = jax.nn.softmax(scores - jnp.max(scores), axis=-1)
    ctx = jnp.einsum("bhqk,bhkd->bhqd", scores, v).transpose(0, 2, 1, 3).reshape(B, L, D)

    def ln(x, g, b, eps=1e-5):
        m = jnp.mean(x, axis=-1, keepdims=True)
        var = jnp.mean((x - m) ** 2, axis=-1, keepdims=True)
        return (x - m) / jnp.sqrt(var + eps) * g[0] + b[0]

    ctx = ln(ctx + seq, params["g1"], params["be1"])
    hdn = jax.nn.relu(ctx @ params["w1"] + params["b1"][0])
    ff = hdn @ params["w2"] + params["b2"][0]
    return ln(ff + ctx, params["g2"], params["be2"])


if __name__ == "__main__":
    B, L, D, D_FF, H = 2, 8, 32, 64, 4

    key = jax.random.PRNGKey(0)
    ks = jax.random.split(key, 16)

    def init_w(k, shape, fan_in):
        return (jax.random.normal(k, shape, jnp.float32) / jnp.sqrt(fan_in)).astype(jnp.float32)

    params = {
        "wq": init_w(ks[0], (D, D), D),   "bq": init_w(ks[1], (1, D), D),
        "wk": init_w(ks[2], (D, D), D),   "bk": init_w(ks[3], (1, D), D),
        "wv": init_w(ks[4], (D, D), D),   "bv": init_w(ks[5], (1, D), D),
        "g1": jnp.ones((1, D), jnp.float32),  "be1": jnp.zeros((1, D), jnp.float32),
        "w1": init_w(ks[6], (D, D_FF), D),    "b1": init_w(ks[7], (1, D_FF), D),
        "w2": init_w(ks[8], (D_FF, D), D_FF), "b2": init_w(ks[9], (1, D), D_FF),
        "g2": jnp.ones((1, D), jnp.float32),  "be2": jnp.zeros((1, D), jnp.float32),
    }

    seq = jax.random.normal(ks[10], (B, L, D), jnp.float32)

    out = transformer_layer(seq, params, n_heads=H)
    out = jax.block_until_ready(out)

    ref = reference_forward(seq, params, n_heads=H)
    assert out.shape == (B, L, D)
    # Tolerance leaves headroom for the EUP approx-reciprocal softmax normalization.
    max_err = float(jnp.max(jnp.abs(out - ref)))
    assert jnp.allclose(out, ref, rtol=1e-2, atol=1e-2), max_err

    print("KERNEL_OK")
</pallas_src>

<mosaic_0001>
module attributes {stable_mosaic.version = 11 : i64} {
  func.func @transformer_layer_kernel(%arg0: i32, %arg1: i32, %arg2: memref<1x8x32xf32, #tpu.memory_space<vmem>>, %arg3: memref<32x32xf32, #tpu.memory_space<vmem>>, %arg4: memref<1x32xf32, #tpu.memory_space<vmem>>, %arg5: memref<32x32xf32, #tpu.memory_space<vmem>>, %arg6: memref<32x1xf32, #tpu.memory_space<vmem>>, %arg7: memref<32x32xf32, #tpu.memory_space<vmem>>, %arg8: memref<1x32xf32, #tpu.memory_space<vmem>>, %arg9: memref<1x32xf32, #tpu.memory_space<vmem>>, %arg10: memref<1x32xf32, #tpu.memory_space<vmem>>, %arg11: memref<32x64xf32, #tpu.memory_space<vmem>>, %arg12: memref<1x64xf32, #tpu.memory_space<vmem>>, %arg13: memref<64x32xf32, #tpu.memory_space<vmem>>, %arg14: memref<1x32xf32, #tpu.memory_space<vmem>>, %arg15: memref<1x32xf32, #tpu.memory_space<vmem>>, %arg16: memref<1x32xf32, #tpu.memory_space<vmem>>, %arg17: memref<1x8x32xf32, #tpu.memory_space<vmem>>, %arg18: memref<4x8x8xf32, #tpu.memory_space<vmem>>, %arg19: memref<8x32xf32, #tpu.memory_space<vmem>>, %arg20: memref<8x32xf32, #tpu.memory_space<vmem>>) attributes {dimension_semantics = [#tpu.dimension_semantics<parallel>, #tpu.dimension_semantics<arbitrary>], iteration_bounds = array<i64: 2, 1>, scalar_prefetch = 0 : i64, scratch_operands = 3 : i64, tpu.core_type = #tpu.core_type<tc>, window_params = [{transform_indices = @transform_0, window_bounds = array<i64: 1, 8, 32>}, {pipeline_mode = #tpu.pipeline_mode<synchronous>, transform_indices = @transform_1, window_bounds = array<i64: 32, 32>}, {pipeline_mode = #tpu.pipeline_mode<synchronous>, transform_indices = @transform_2, window_bounds = array<i64: 1, 32>}, {pipeline_mode = #tpu.pipeline_mode<synchronous>, transform_indices = @transform_3, window_bounds = array<i64: 32, 32>}, {pipeline_mode = #tpu.pipeline_mode<synchronous>, transform_indices = @transform_4, window_bounds = array<i64: 32, 1>}, {pipeline_mode = #tpu.pipeline_mode<synchronous>, transform_indices = @transform_5, window_bounds = array<i64: 32, 32>}, {pipeline_mode = #tpu.pipeline_mode<synchronous>, transform_indices = @transform_6, window_bounds = array<i64: 1, 32>}, {pipeline_mode = #tpu.pipeline_mode<synchronous>, transform_indices = @transform_7, window_bounds = array<i64: 1, 32>}, {pipeline_mode = #tpu.pipeline_mode<synchronous>, transform_indices = @transform_8, window_bounds = array<i64: 1, 32>}, {pipeline_mode = #tpu.pipeline_mode<synchronous>, transform_indices = @transform_9, window_bounds = array<i64: 32, 64>}, {pipeline_mode = #tpu.pipeline_mode<synchronous>, transform_indices = @transform_10, window_bounds = array<i64: 1, 64>}, {pipeline_mode = #tpu.pipeline_mode<synchronous>, transform_indices = @transform_11, window_bounds = array<i64: 64, 32>}, {pipeline_mode = #tpu.pipeline_mode<synchronous>, transform_indices = @transform_12, window_bounds = array<i64: 1, 32>}, {pipeline_mode = #tpu.pipeline_mode<synchronous>, transform_indices = @transform_13, window_bounds = array<i64: 1, 32>}, {pipeline_mode = #tpu.pipeline_mode<synchronous>, transform_indices = @transform_14, window_bounds = array<i64: 1, 32>}, {transform_indices = @transform_15, window_bounds = array<i64: 1, 8, 32>}]} {
    %c0_i32 = arith.constant 0 : i32
    %0 = arith.cmpi eq, %arg1, %c0_i32 : i32
    %1 = arith.extui %0 : i1 to i32
    %c0_i32_0 = arith.constant 0 : i32
    %2 = arith.cmpi ne, %1, %c0_i32_0 : i32
    scf.if %2 {
      %c0_66 = arith.constant 0 : index
      %c0_67 = arith.constant 0 : index
      %c0_68 = arith.constant 0 : index
      %119 = vector.load %arg2[%c0_66, %c0_67, %c0_68] : memref<1x8x32xf32, #tpu.memory_space<vmem>>, vector<1x8x32xf32>
      %120 = vector.shape_cast %119 : vector<1x8x32xf32> to vector<8x32xf32>
      %c0_69 = arith.constant 0 : index
      %c0_70 = arith.constant 0 : index
      %121 = vector.load %arg5[%c0_69, %c0_70] : memref<32x32xf32, #tpu.memory_space<vmem>>, vector<32x32xf32>
      %122 = tpu.transpose %120, [1, 0] : vector<8x32xf32> -> vector<32x8xf32>
      %cst_71 = arith.constant dense<0.000000e+00> : vector<32x8xf32>
      %123 = tpu.matmul %121, %122, %cst_71 {dimension_numbers = #tpu.dot_dimension_numbers<[1], [0], [0], [1], [0, 0, 1, 1], [], []>} : vector<32x32xf32>, vector<32x8xf32>, vector<32x8xf32> -> vector<32x8xf32>
      %c0_72 = arith.constant 0 : index
      %c0_73 = arith.constant 0 : index
      %124 = vector.load %arg6[%c0_72, %c0_73] : memref<32x1xf32, #tpu.memory_space<vmem>>, vector<32x1xf32>
      %125 = vector.broadcast %124 : vector<32x1xf32> to vector<32x8xf32>
      %126 = arith.addf %123, %125 : vector<32x8xf32>
      %c0_74 = arith.constant 0 : index
      %c0_75 = arith.constant 0 : index
      %127 = vector.load %arg7[%c0_74, %c0_75] : memref<32x32xf32, #tpu.memory_space<vmem>>, vector<32x32xf32>
      %cst_76 = arith.constant dense<0.000000e+00> : vector<8x32xf32>
      %128 = tpu.matmul %120, %127, %cst_76 {dimension_numbers = #tpu.dot_dimension_numbers<[1], [0], [0], [1], [0, 0, 1, 1], [], []>} : vector<8x32xf32>, vector<32x32xf32>, vector<8x32xf32> -> vector<8x32xf32>
      %c0_77 = arith.constant 0 : index
      %c0_78 = arith.constant 0 : index
      %129 = vector.load %arg8[%c0_77, %c0_78] : memref<1x32xf32, #tpu.memory_space<vmem>>, vector<1x32xf32>
      %130 = vector.broadcast %129 : vector<1x32xf32> to vector<8x32xf32>
      %131 = arith.addf %128, %130 : vector<8x32xf32>
      %132 = vector.shape_cast %126 : vector<32x8xf32> to vector<4x8x8xf32>
      %c0_79 = arith.constant 0 : index
      %c0_80 = arith.constant 0 : index
      %c0_81 = arith.constant 0 : index
      %133 = vector.load %arg18[%c0_79, %c0_80, %c0_81] : memref<4x8x8xf32, #tpu.memory_space<vmem>>, vector<4x8x8xf32>
      tpu.vector_store %arg18[%c0_79, %c0_80, %c0_81], %132 {strides = array<i32>} : memref<4x8x8xf32, #tpu.memory_space<vmem>>, vector<4x8x8xf32>,
      %c0_82 = arith.constant 0 : index
      %c0_83 = arith.constant 0 : index
      %134 = vector.load %arg19[%c0_82, %c0_83] : memref<8x32xf32, #tpu.memory_space<vmem>>, vector<8x32xf32>
      tpu.vector_store %arg19[%c0_82, %c0_83], %131 {strides = array<i32>} : memref<8x32xf32, #tpu.memory_space<vmem>>, vector<8x32xf32>,
    } else {
    }
    %c8_i32 = arith.constant 8 : i32
    %3 = arith.muli %arg1, %c8_i32 : i32
    %4 = tpu.assume_multiple %3, 8 : i32
    %c0 = arith.constant 0 : index
    %5 = arith.index_cast %4 : i32 to index
    %c0_1 = arith.constant 0 : index
    %6 = vector.load %arg2[%c0, %5, %c0_1] : memref<1x8x32xf32, #tpu.memory_space<vmem>>, vector<1x8x32xf32>
    %7 = vector.shape_cast %6 : vector<1x8x32xf32> to vector<8x32xf32>
    %c0_2 = arith.constant 0 : index
    %c0_3 = arith.constant 0 : index
    %8 = vector.load %arg3[%c0_2, %c0_3] : memref<32x32xf32, #tpu.memory_space<vmem>>, vector<32x32xf32>
    %cst = arith.constant dense<0.000000e+00> : vector<8x32xf32>
    %9 = tpu.matmul %7, %8, %cst {dimension_numbers = #tpu.dot_dimension_numbers<[1], [0], [0], [1], [0, 0, 1, 1], [], []>} : vector<8x32xf32>, vector<32x32xf32>, vector<8x32xf32> -> vector<8x32xf32>
    %c0_4 = arith.constant 0 : index
    %c0_5 = arith.constant 0 : index
    %10 = vector.load %arg4[%c0_4, %c0_5] : memref<1x32xf32, #tpu.memory_space<vmem>>, vector<1x32xf32>
    %11 = vector.broadcast %10 : vector<1x32xf32> to vector<8x32xf32>
    %12 = arith.addf %9, %11 : vector<8x32xf32>
    %cst_6 = arith.constant 0.353553385 : f32
    %13 = vector.broadcast %cst_6 : f32 to vector<8x32xf32>
    %14 = arith.mulf %12, %13 : vector<8x32xf32>
    %15 = vector.shape_cast %14 : vector<8x32xf32> to vector<8x4x8xf32>
    %16 = tpu.transpose %15, [1, 0, 2] : vector<8x4x8xf32> -> vector<4x8x8xf32>
    %c0_7 = arith.constant 0 : index
    %c0_8 = arith.constant 0 : index
    %c0_9 = arith.constant 0 : index
    %17 = vector.load %arg18[%c0_7, %c0_8, %c0_9] : memref<4x8x8xf32, #tpu.memory_space<vmem>>, vector<4x8x8xf32>
    "tpu.trace_start"() <{level = 10 : i32, message = "hqd,hdk->hqk"}> : () -> ()
    %cst_10 = arith.constant dense<0.000000e+00> : vector<4x8x8xf32>
    %18 = tpu.matmul %16, %17, %cst_10 {dimension_numbers = #tpu.dot_dimension_numbers<[2], [1], [1], [2], [0, 0, 0, 1, 1, 2], [0], [0]>} : vector<4x8x8xf32>, vector<4x8x8xf32>, vector<4x8x8xf32> -> vector<4x8x8xf32>
    "tpu.trace_stop"() : () -> ()
    %cst_11 = arith.constant dense<0xFF800000> : vector<4x8xf32>
    %19 = vector.multi_reduction <maximumf>, %18, %cst_11 [2] : vector<4x8x8xf32> to vector<4x8xf32>
    %20 = vector.shape_cast %19 : vector<4x8xf32> to vector<4x8x1xf32>
    %21 = vector.broadcast %20 : vector<4x8x1xf32> to vector<4x8x8xf32>
    %22 = arith.subf %18, %21 : vector<4x8x8xf32>
    %23 = math.exp %22 : vector<4x8x8xf32>
    %cst_12 = arith.constant dense<0.000000e+00> : vector<4x8xf32>
    %24 = vector.multi_reduction <add>, %23, %cst_12 [2] : vector<4x8x8xf32> to vector<4x8xf32>
    %25 = vector.shape_cast %24 : vector<4x8xf32> to vector<4x8x1xf32>
    %26 = tpu.reciprocal %25 {approx = true} : vector<4x8x1xf32> -> vector<4x8x1xf32>
    %27 = vector.broadcast %26 : vector<4x8x1xf32> to vector<4x8x8xf32>
    %28 = arith.mulf %23, %27 : vector<4x8x8xf32>
    %29 = vector.extract_strided_slice %28 {offsets = [0, 0, 0], sizes = [1, 8, 8], strides = [1, 1, 1]} : vector<4x8x8xf32> to vector<1x8x8xf32>
    %30 = vector.shape_cast %29 : vector<1x8x8xf32> to vector<8x8xf32>
    %c0_13 = arith.constant 0 : index
    %c0_14 = arith.constant 0 : index
    %31 = vector.load %arg19[%c0_13, %c0_14] : memref<8x32xf32, #tpu.memory_space<vmem>>, vector<8x8xf32>
    %cst_15 = arith.constant dense<0.000000e+00> : vector<8x8xf32>
    %32 = tpu.matmul %30, %31, %cst_15 {dimension_numbers = #tpu.dot_dimension_numbers<[1], [0], [0], [1], [0, 0, 1, 1], [], []>} : vector<8x8xf32>, vector<8x8xf32>, vector<8x8xf32> -> vector<8x8xf32>
    %c0_16 = arith.constant 0 : index
    %c0_17 = arith.constant 0 : index
    %33 = vector.load %arg20[%c0_16, %c0_17] : memref<8x32xf32, #tpu.memory_space<vmem>>, vector<8x8xf32>
    tpu.vector_store %arg20[%c0_16, %c0_17], %32 {strides = array<i32>} : memref<8x32xf32, #tpu.memory_space<vmem>>, vector<8x8xf32>,
    %34 = vector.extract_strided_slice %28 {offsets = [1, 0, 0], sizes = [1, 8, 8], strides = [1, 1, 1]} : vector<4x8x8xf32> to vector<1x8x8xf32>
    %35 = vector.shape_cast %34 : vector<1x8x8xf32> to vector<8x8xf32>
    %c0_18 = arith.constant 0 : index
    %c8 = arith.constant 8 : index
    %36 = vector.load %arg19[%c0_18, %c8] : memref<8x32xf32, #tpu.memory_space<vmem>>, vector<8x8xf32>
    %cst_19 = arith.constant dense<0.000000e+00> : vector<8x8xf32>
    %37 = tpu.matmul %35, %36, %cst_19 {dimension_numbers = #tpu.dot_dimension_numbers<[1], [0], [0], [1], [0, 0, 1, 1], [], []>} : vector<8x8xf32>, vector<8x8xf32>, vector<8x8xf32> -> vector<8x8xf32>
    %c0_20 = arith.constant 0 : index
    %c8_21 = arith.constant 8 : index
    %38 = vector.load %arg20[%c0_20, %c8_21] : memref<8x32xf32, #tpu.memory_space<vmem>>, vector<8x8xf32>
    tpu.vector_store %arg20[%c0_20, %c8_21], %37 {strides = array<i32>} : memref<8x32xf32, #tpu.memory_space<vmem>>, vector<8x8xf32>,
    %39 = vector.extract_strided_slice %28 {offsets = [2, 0, 0], sizes = [1, 8, 8], strides = [1, 1, 1]} : vector<4x8x8xf32> to vector<1x8x8xf32>
    %40 = vector.shape_cast %39 : vector<1x8x8xf32> to vector<8x8xf32>
    %c0_22 = arith.constant 0 : index
    %c16 = arith.constant 16 : index
    %41 = vector.load %arg19[%c0_22, %c16] : memref<8x32xf32, #tpu.memory_space<vmem>>, vector<8x8xf32>
    %cst_23 = arith.constant dense<0.000000e+00> : vector<8x8xf32>
    %42 = tpu.matmul %40, %41, %cst_23 {dimension_numbers = #tpu.dot_dimension_numbers<[1], [0], [0], [1], [0, 0, 1, 1], [], []>} : vector<8x8xf32>, vector<8x8xf32>, vector<8x8xf32> -> vector<8x8xf32>
    %c0_24 = arith.constant 0 : index
    %c16_25 = arith.constant 16 : index
    %43 = vector.load %arg20[%c0_24, %c16_25] : memref<8x32xf32, #tpu.memory_space<vmem>>, vector<8x8xf32>
    tpu.vector_store %arg20[%c0_24, %c16_25], %42 {strides = array<i32>} : memref<8x32xf32, #tpu.memory_space<vmem>>, vector<8x8xf32>,
    %44 = vector.extract_strided_slice %28 {offsets = [3, 0, 0], sizes = [1, 8, 8], strides = [1, 1, 1]} : vector<4x8x8xf32> to vector<1x8x8xf32>
    %45 = vector.shape_cast %44 : vector<1x8x8xf32> to vector<8x8xf32>
    %c0_26 = arith.constant 0 : index
    %c24 = arith.constant 24 : index
    %46 = vector.load %arg19[%c0_26, %c24] : memref<8x32xf32, #tpu.memory_space<vmem>>, vector<8x8xf32>
    %cst_27 = arith.constant dense<0.000000e+00> : vector<8x8xf32>
    %47 = tpu.matmul %45, %46, %cst_27 {dimension_numbers = #tpu.dot_dimension_numbers<[1], [0], [0], [1], [0, 0, 1, 1], [], []>} : vector<8x8xf32>, vector<8x8xf32>, vector<8x8xf32> -> vector<8x8xf32>
    %c0_28 = arith.constant 0 : index
    %c24_29 = arith.constant 24 : index
    %48 = vector.load %arg20[%c0_28, %c24_29] : memref<8x32xf32, #tpu.memory_space<vmem>>, vector<8x8xf32>
    tpu.vector_store %arg20[%c0_28, %c24_29], %47 {strides = array<i32>} : memref<8x32xf32, #tpu.memory_space<vmem>>, vector<8x8xf32>,
    %c0_30 = arith.constant 0 : index
    %c0_31 = arith.constant 0 : index
    %49 = vector.load %arg20[%c0_30, %c0_31] : memref<8x32xf32, #tpu.memory_space<vmem>>, vector<8x32xf32>
    %50 = arith.addf %49, %7 : vector<8x32xf32>
    %c0_32 = arith.constant 0 : index
    %c0_33 = arith.constant 0 : index
    %51 = vector.load %arg9[%c0_32, %c0_33] : memref<1x32xf32, #tpu.memory_space<vmem>>, vector<1x32xf32>
    %c0_34 = arith.constant 0 : index
    %c0_35 = arith.constant 0 : index
    %52 = vector.load %arg10[%c0_34, %c0_35] : memref<1x32xf32, #tpu.memory_space<vmem>>, vector<1x32xf32>
    %cst_36 = arith.constant dense<0.000000e+00> : vector<8xf32>
    %53 = vector.multi_reduction <add>, %50, %cst_36 [1] : vector<8x32xf32> to vector<8xf32>
    %54 = vector.shape_cast %53 : vector<8xf32> to vector<8x1xf32>
    %55 = arith.mulf %50, %50 : vector<8x32xf32>
    %cst_37 = arith.constant dense<0.000000e+00> : vector<8xf32>
    %56 = vector.multi_reduction <add>, %55, %cst_37 [1] : vector<8x32xf32> to vector<8xf32>
    %57 = vector.shape_cast %56 : vector<8xf32> to vector<8x1xf32>
    %cst_38 = arith.constant 3.125000e-02 : f32
    %58 = vector.broadcast %cst_38 : f32 to vector<8x1xf32>
    %59 = arith.mulf %54, %58 : vector<8x1xf32>
    %cst_39 = arith.constant 3.125000e-02 : f32
    %60 = vector.broadcast %cst_39 : f32 to vector<8x1xf32>
    %61 = arith.mulf %57, %60 : vector<8x1xf32>
    %62 = arith.mulf %59, %59 : vector<8x1xf32>
    %63 = arith.subf %61, %62 : vector<8x1xf32>
    %cst_40 = arith.constant 0.000000e+00 : f32
    %64 = vector.broadcast %cst_40 : f32 to vector<8x1xf32>
    %65 = arith.maximumf %63, %64 : vector<8x1xf32>
    %66 = vector.broadcast %59 : vector<8x1xf32> to vector<8x32xf32>
    %67 = arith.subf %50, %66 : vector<8x32xf32>
    %cst_41 = arith.constant 9.99999974E-6 : f32
    %68 = vector.broadcast %cst_41 : f32 to vector<8x1xf32>
    %69 = arith.addf %65, %68 : vector<8x1xf32>
    %70 = math.rsqrt %69 : vector<8x1xf32>
    %71 = vector.broadcast %70 : vector<8x1xf32> to vector<8x32xf32>
    %72 = arith.mulf %67, %71 : vector<8x32xf32>
    %73 = vector.broadcast %51 : vector<1x32xf32> to vector<8x32xf32>
    %74 = arith.mulf %72, %73 : vector<8x32xf32>
    %75 = vector.broadcast %52 : vector<1x32xf32> to vector<8x32xf32>
    %76 = arith.addf %74, %75 : vector<8x32xf32>
    %c0_42 = arith.constant 0 : index
    %c0_43 = arith.constant 0 : index
    %77 = vector.load %arg11[%c0_42, %c0_43] : memref<32x64xf32, #tpu.memory_space<vmem>>, vector<32x64xf32>
    %cst_44 = arith.constant dense<0.000000e+00> : vector<8x64xf32>
    %78 = tpu.matmul %76, %77, %cst_44 {dimension_numbers = #tpu.dot_dimension_numbers<[1], [0], [0], [1], [0, 0, 1, 1], [], []>} : vector<8x32xf32>, vector<32x64xf32>, vector<8x64xf32> -> vector<8x64xf32>
    %c0_45 = arith.constant 0 : index
    %c0_46 = arith.constant 0 : index
    %79 = vector.load %arg12[%c0_45, %c0_46] : memref<1x64xf32, #tpu.memory_space<vmem>>, vector<1x64xf32>
    %80 = vector.broadcast %79 : vector<1x64xf32> to vector<8x64xf32>
    %81 = arith.addf %78, %80 : vector<8x64xf32>
    %cst_47 = arith.constant 0.000000e+00 : f32
    %82 = vector.broadcast %cst_47 : f32 to vector<8x64xf32>
    %83 = arith.maximumf %81, %82 : vector<8x64xf32>
    %c0_48 = arith.constant 0 : index
    %c0_49 = arith.constant 0 : index
    %84 = vector.load %arg13[%c0_48, %c0_49] : memref<64x32xf32, #tpu.memory_space<vmem>>, vector<64x32xf32>
    %cst_50 = arith.constant dense<0.000000e+00> : vector<8x32xf32>
    %85 = tpu.matmul %83, %84, %cst_50 {dimension_numbers = #tpu.dot_dimension_numbers<[1], [0], [0], [1], [0, 0, 1, 1], [], []>} : vector<8x64xf32>, vector<64x32xf32>, vector<8x32xf32> -> vector<8x32xf32>
    %c0_51 = arith.constant 0 : index
    %c0_52 = arith.constant 0 : index
    %86 = vector.load %arg14[%c0_51, %c0_52] : memref<1x32xf32, #tpu.memory_space<vmem>>, vector<1x32xf32>
    %87 = vector.broadcast %86 : vector<1x32xf32> to vector<8x32xf32>
    %88 = arith.addf %85, %87 : vector<8x32xf32>
    %89 = arith.addf %88, %76 : vector<8x32xf32>
    %c0_53 = arith.constant 0 : index
    %c0_54 = arith.constant 0 : index
    %90 = vector.load %arg15[%c0_53, %c0_54] : memref<1x32xf32, #tpu.memory_space<vmem>>, vector<1x32xf32>
    %c0_55 = arith.constant 0 : index
    %c0_56 = arith.constant 0 : index
    %91 = vector.load %arg16[%c0_55, %c0_56] : memref<1x32xf32, #tpu.memory_space<vmem>>, vector<1x32xf32>
    %cst_57 = arith.constant dense<0.000000e+00> : vector<8xf32>
    %92 = vector.multi_reduction <add>, %89, %cst_57 [1] : vector<8x32xf32> to vector<8xf32>
    %93 = vector.shape_cast %92 : vector<8xf32> to vector<8x1xf32>
    %94 = arith.mulf %89, %89 : vector<8x32xf32>
    %cst_58 = arith.constant dense<0.000000e+00> : vector<8xf32>
    %95 = vector.multi_reduction <add>, %94, %cst_58 [1] : vector<8x32xf32> to vector<8xf32>
    %96 = vector.shape_cast %95 : vector<8xf32> to vector<8x1xf32>
    %cst_59 = arith.constant 3.125000e-02 : f32
    %97 = vector.broadcast %cst_59 : f32 to vector<8x1xf32>
    %98 = arith.mulf %93, %97 : vector<8x1xf32>
    %cst_60 = arith.constant 3.125000e-02 : f32
    %99 = vector.broadcast %cst_60 : f32 to vector<8x1xf32>
    %100 = arith.mulf %96, %99 : vector<8x1xf32>
    %101 = arith.mulf %98, %98 : vector<8x1xf32>
    %102 = arith.subf %100, %101 : vector<8x1xf32>
    %cst_61 = arith.constant 0.000000e+00 : f32
    %103 = vector.broadcast %cst_61 : f32 to vector<8x1xf32>
    %104 = arith.maximumf %102, %103 : vector<8x1xf32>
    %105 = vector.broadcast %98 : vector<8x1xf32> to vector<8x32xf32>
    %106 = arith.subf %89, %105 : vector<8x32xf32>
    %cst_62 = arith.constant 9.99999974E-6 : f32
    %107 = vector.broadcast %cst_62 : f32 to vector<8x1xf32>
    %108 = arith.addf %104, %107 : vector<8x1xf32>
    %109 = math.rsqrt %108 : vector<8x1xf32>
    %110 = vector.broadcast %109 : vector<8x1xf32> to vector<8x32xf32>
    %111 = arith.mulf %106, %110 : vector<8x32xf32>
    %112 = vector.broadcast %90 : vector<1x32xf32> to vector<8x32xf32>
    %113 = arith.mulf %111, %112 : vector<8x32xf32>
    %114 = vector.broadcast %91 : vector<1x32xf32> to vector<8x32xf32>
    %115 = arith.addf %113, %114 : vector<8x32xf32>
    %c0_63 = arith.constant 0 : index
    %c0_64 = arith.constant 0 : index
    %c0_65 = arith.constant 0 : index
    %116 = vector.load %arg17[%c0_63, %c0_64, %c0_65] : memref<1x8x32xf32, #tpu.memory_space<vmem>>, vector<1x8x32xf32>
    %117 = vector.shape_cast %116 : vector<1x8x32xf32> to vector<8x32xf32>
    %118 = vector.shape_cast %115 : vector<8x32xf32> to vector<1x8x32xf32>
    tpu.vector_store %arg17[%c0_63, %c0_64, %c0_65], %118 {strides = array<i32>} : memref<1x8x32xf32, #tpu.memory_space<vmem>>, vector<1x8x32xf32>,
    return
  }
  func.func @transform_0(%arg0: i32, %arg1: i32) -> (i32, i32, i32) {
    %c0_i32 = arith.constant 0 : i32
    %c0_i32_0 = arith.constant 0 : i32
    %c0_i32_1 = arith.constant 0 : i32
    return %arg0, %c0_i32, %c0_i32_0 : i32, i32, i32
  }
  func.func @transform_1(%arg0: i32, %arg1: i32) -> (i32, i32) {
    %c0_i32 = arith.constant 0 : i32
    %c0_i32_0 = arith.constant 0 : i32
    %c0_i32_1 = arith.constant 0 : i32
    return %c0_i32, %c0_i32_0 : i32, i32
  }
  func.func @transform_2(%arg0: i32, %arg1: i32) -> (i32, i32) {
    %c0_i32 = arith.constant 0 : i32
    %c0_i32_0 = arith.constant 0 : i32
    %c0_i32_1 = arith.constant 0 : i32
    return %c0_i32, %c0_i32_0 : i32, i32
  }
  func.func @transform_3(%arg0: i32, %arg1: i32) -> (i32, i32) {
    %c0_i32 = arith.constant 0 : i32
    %c0_i32_0 = arith.constant 0 : i32
    %c0_i32_1 = arith.constant 0 : i32
    return %c0_i32, %c0_i32_0 : i32, i32
  }
  func.func @transform_4(%arg0: i32, %arg1: i32) -> (i32, i32) {
    %c0_i32 = arith.constant 0 : i32
    %c0_i32_0 = arith.constant 0 : i32
    %c0_i32_1 = arith.constant 0 : i32
    return %c0_i32, %c0_i32_0 : i32, i32
  }
  func.func @transform_5(%arg0: i32, %arg1: i32) -> (i32, i32) {
    %c0_i32 = arith.constant 0 : i32
    %c0_i32_0 = arith.constant 0 : i32
    %c0_i32_1 = arith.constant 0 : i32
    return %c0_i32, %c0_i32_0 : i32, i32
  }
  func.func @transform_6(%arg0: i32, %arg1: i32) -> (i32, i32) {
    %c0_i32 = arith.constant 0 : i32
    %c0_i32_0 = arith.constant 0 : i32
    %c0_i32_1 = arith.constant 0 : i32
    return %c0_i32, %c0_i32_0 : i32, i32
  }
  func.func @transform_7(%arg0: i32, %arg1: i32) -> (i32, i32) {
    %c0_i32 = arith.constant 0 : i32
    %c0_i32_0 = arith.constant 0 : i32
    %c0_i32_1 = arith.constant 0 : i32
    return %c0_i32, %c0_i32_0 : i32, i32
  }
  func.func @transform_8(%arg0: i32, %arg1: i32) -> (i32, i32) {
    %c0_i32 = arith.constant 0 : i32
    %c0_i32_0 = arith.constant 0 : i32
    %c0_i32_1 = arith.constant 0 : i32
    return %c0_i32, %c0_i32_0 : i32, i32
  }
  func.func @transform_9(%arg0: i32, %arg1: i32) -> (i32, i32) {
    %c0_i32 = arith.constant 0 : i32
    %c0_i32_0 = arith.constant 0 : i32
    %c0_i32_1 = arith.constant 0 : i32
    return %c0_i32, %c0_i32_0 : i32, i32
  }
  func.func @transform_10(%arg0: i32, %arg1: i32) -> (i32, i32) {
    %c0_i32 = arith.constant 0 : i32
    %c0_i32_0 = arith.constant 0 : i32
    %c0_i32_1 = arith.constant 0 : i32
    return %c0_i32, %c0_i32_0 : i32, i32
  }
  func.func @transform_11(%arg0: i32, %arg1: i32) -> (i32, i32) {
    %c0_i32 = arith.constant 0 : i32
    %c0_i32_0 = arith.constant 0 : i32
    %c0_i32_1 = arith.constant 0 : i32
    return %c0_i32, %c0_i32_0 : i32, i32
  }
  func.func @transform_12(%arg0: i32, %arg1: i32) -> (i32, i32) {
    %c0_i32 = arith.constant 0 : i32
    %c0_i32_0 = arith.constant 0 : i32
    %c0_i32_1 = arith.constant 0 : i32
    return %c0_i32, %c0_i32_0 : i32, i32
  }
  func.func @transform_13(%arg0: i32, %arg1: i32) -> (i32, i32) {
    %c0_i32 = arith.constant 0 : i32
    %c0_i32_0 = arith.constant 0 : i32
    %c0_i32_1 = arith.constant 0 : i32
    return %c0_i32, %c0_i32_0 : i32, i32
  }
  func.func @transform_14(%arg0: i32, %arg1: i32) -> (i32, i32) {
    %c0_i32 = arith.constant 0 : i32
    %c0_i32_0 = arith.constant 0 : i32
    %c0_i32_1 = arith.constant 0 : i32
    return %c0_i32, %c0_i32_0 : i32, i32
  }
  func.func @transform_15(%arg0: i32, %arg1: i32) -> (i32, i32, i32) {
    %c0_i32 = arith.constant 0 : i32
    %c0_i32_0 = arith.constant 0 : i32
    return %arg0, %arg1, %c0_i32 : i32, i32, i32
  }
}

module attributes {stable_mosaic.version = 11 : i64} {
  func.func @transformer_layer_kernel(%arg0: i32, %arg1: i32, %arg2: memref<1x8x32xf32, #tpu.memory_space<vmem>>, %arg3: memref<32x32xf32, #tpu.memory_space<vmem>>, %arg4: memref<1x32xf32, #tpu.memory_space<vmem>>, %arg5: memref<32x32xf32, #tpu.memory_space<vmem>>, %arg6: memref<32x1xf32, #tpu.memory_space<vmem>>, %arg7: memref<32x32xf32, #tpu.memory_space<vmem>>, %arg8: memref<1x32xf32, #tpu.memory_space<vmem>>, %arg9: memref<1x32xf32, #tpu.memory_space<vmem>>, %arg10: memref<1x32xf32, #tpu.memory_space<vmem>>, %arg11: memref<32x64xf32, #tpu.memory_space<vmem>>, %arg12: memref<1x64xf32, #tpu.memory_space<vmem>>, %arg13: memref<64x32xf32, #tpu.memory_space<vmem>>, %arg14: memref<1x32xf32, #tpu.memory_space<vmem>>, %arg15: memref<1x32xf32, #tpu.memory_space<vmem>>, %arg16: memref<1x32xf32, #tpu.memory_space<vmem>>, %arg17: memref<1x8x32xf32, #tpu.memory_space<vmem>>, %arg18: memref<4x8x8xf32, #tpu.memory_space<vmem>>, %arg19: memref<8x32xf32, #tpu.memory_space<vmem>>, %arg20: memref<8x32xf32, #tpu.memory_space<vmem>>) attributes {dimension_semantics = [#tpu.dimension_semantics<parallel>, #tpu.dimension_semantics<arbitrary>], iteration_bounds = array<i64: 2, 1>, scalar_prefetch = 0 : i64, scratch_operands = 3 : i64, tpu.core_type = #tpu.core_type<tc>, window_params = [{transform_indices = @transform_0, window_bounds = array<i64: 1, 8, 32>}, {pipeline_mode = #tpu.pipeline_mode<synchronous>, transform_indices = @transform_1, window_bounds = array<i64: 32, 32>}, {pipeline_mode = #tpu.pipeline_mode<synchronous>, transform_indices = @transform_2, window_bounds = array<i64: 1, 32>}, {pipeline_mode = #tpu.pipeline_mode<synchronous>, transform_indices = @transform_3, window_bounds = array<i64: 32, 32>}, {pipeline_mode = #tpu.pipeline_mode<synchronous>, transform_indices = @transform_4, window_bounds = array<i64: 32, 1>}, {pipeline_mode = #tpu.pipeline_mode<synchronous>, transform_indices = @transform_5, window_bounds = array<i64: 32, 32>}, {pipeline_mode = #tpu.pipeline_mode<synchronous>, transform_indices = @transform_6, window_bounds = array<i64: 1, 32>}, {pipeline_mode = #tpu.pipeline_mode<synchronous>, transform_indices = @transform_7, window_bounds = array<i64: 1, 32>}, {pipeline_mode = #tpu.pipeline_mode<synchronous>, transform_indices = @transform_8, window_bounds = array<i64: 1, 32>}, {pipeline_mode = #tpu.pipeline_mode<synchronous>, transform_indices = @transform_9, window_bounds = array<i64: 32, 64>}, {pipeline_mode = #tpu.pipeline_mode<synchronous>, transform_indices = @transform_10, window_bounds = array<i64: 1, 64>}, {pipeline_mode = #tpu.pipeline_mode<synchronous>, transform_indices = @transform_11, window_bounds = array<i64: 64, 32>}, {pipeline_mode = #tpu.pipeline_mode<synchronous>, transform_indices = @transform_12, window_bounds = array<i64: 1, 32>}, {pipeline_mode = #tpu.pipeline_mode<synchronous>, transform_indices = @transform_13, window_bounds = array<i64: 1, 32>}, {pipeline_mode = #tpu.pipeline_mode<synchronous>, transform_indices = @transform_14, window_bounds = array<i64: 1, 32>}, {transform_indices = @transform_15, window_bounds = array<i64: 1, 8, 32>}]} {
    %c0_i32 = arith.constant 0 : i32
    %0 = arith.cmpi eq, %arg1, %c0_i32 : i32
    %1 = arith.extui %0 : i1 to i32
    %c0_i32_0 = arith.constant 0 : i32
    %2 = arith.cmpi ne, %1, %c0_i32_0 : i32
    scf.if %2 {
      %c0_66 = arith.constant 0 : index
      %c0_67 = arith.constant 0 : index
      %c0_68 = arith.constant 0 : index
      %119 = vector.load %arg2[%c0_66, %c0_67, %c0_68] : memref<1x8x32xf32, #tpu.memory_space<vmem>>, vector<1x8x32xf32>
      %120 = vector.shape_cast %119 : vector<1x8x32xf32> to vector<8x32xf32>
      %c0_69 = arith.constant 0 : index
      %c0_70 = arith.constant 0 : index
      %121 = vector.load %arg5[%c0_69, %c0_70] : memref<32x32xf32, #tpu.memory_space<vmem>>, vector<32x32xf32>
      %122 = tpu.transpose %120, [1, 0] : vector<8x32xf32> -> vector<32x8xf32>
      %cst_71 = arith.constant dense<0.000000e+00> : vector<32x8xf32>
      %123 = tpu.matmul %121, %122, %cst_71 {dimension_numbers = #tpu.dot_dimension_numbers<[1], [0], [0], [1], [0, 0, 1, 1], [], []>} : vector<32x32xf32>, vector<32x8xf32>, vector<32x8xf32> -> vector<32x8xf32>
      %c0_72 = arith.constant 0 : index
      %c0_73 = arith.constant 0 : index
      %124 = vector.load %arg6[%c0_72, %c0_73] : memref<32x1xf32, #tpu.memory_space<vmem>>, vector<32x1xf32>
      %125 = vector.broadcast %124 : vector<32x1xf32> to vector<32x8xf32>
      %126 = arith.addf %123, %125 : vector<32x8xf32>
      %c0_74 = arith.constant 0 : index
      %c0_75 = arith.constant 0 : index
      %127 = vector.load %arg7[%c0_74, %c0_75] : memref<32x32xf32, #tpu.memory_space<vmem>>, vector<32x32xf32>
      %cst_76 = arith.constant dense<0.000000e+00> : vector<8x32xf32>
      %128 = tpu.matmul %120, %127, %cst_76 {dimension_numbers = #tpu.dot_dimension_numbers<[1], [0], [0], [1], [0, 0, 1, 1], [], []>} : vector<8x32xf32>, vector<32x32xf32>, vector<8x32xf32> -> vector<8x32xf32>
      %c0_77 = arith.constant 0 : index
      %c0_78 = arith.constant 0 : index
      %129 = vector.load %arg8[%c0_77, %c0_78] : memref<1x32xf32, #tpu.memory_space<vmem>>, vector<1x32xf32>
      %130 = vector.broadcast %129 : vector<1x32xf32> to vector<8x32xf32>
      %131 = arith.addf %128, %130 : vector<8x32xf32>
      %132 = vector.shape_cast %126 : vector<32x8xf32> to vector<4x8x8xf32>
      %c0_79 = arith.constant 0 : index
      %c0_80 = arith.constant 0 : index
      %c0_81 = arith.constant 0 : index
      %133 = vector.load %arg18[%c0_79, %c0_80, %c0_81] : memref<4x8x8xf32, #tpu.memory_space<vmem>>, vector<4x8x8xf32>
      tpu.vector_store %arg18[%c0_79, %c0_80, %c0_81], %132 {strides = array<i32>} : memref<4x8x8xf32, #tpu.memory_space<vmem>>, vector<4x8x8xf32>,
      %c0_82 = arith.constant 0 : index
      %c0_83 = arith.constant 0 : index
      %134 = vector.load %arg19[%c0_82, %c0_83] : memref<8x32xf32, #tpu.memory_space<vmem>>, vector<8x32xf32>
      tpu.vector_store %arg19[%c0_82, %c0_83], %131 {strides = array<i32>} : memref<8x32xf32, #tpu.memory_space<vmem>>, vector<8x32xf32>,
    } else {
    }
    %c8_i32 = arith.constant 8 : i32
    %3 = arith.muli %arg1, %c8_i32 : i32
    %4 = tpu.assume_multiple %3, 8 : i32
    %c0 = arith.constant 0 : index
    %5 = arith.index_cast %4 : i32 to index
    %c0_1 = arith.constant 0 : index
    %6 = vector.load %arg2[%c0, %5, %c0_1] : memref<1x8x32xf32, #tpu.memory_space<vmem>>, vector<1x8x32xf32>
    %7 = vector.shape_cast %6 : vector<1x8x32xf32> to vector<8x32xf32>
    %c0_2 = arith.constant 0 : index
    %c0_3 = arith.constant 0 : index
    %8 = vector.load %arg3[%c0_2, %c0_3] : memref<32x32xf32, #tpu.memory_space<vmem>>, vector<32x32xf32>
    %cst = arith.constant dense<0.000000e+00> : vector<8x32xf32>
    %9 = tpu.matmul %7, %8, %cst {dimension_numbers = #tpu.dot_dimension_numbers<[1], [0], [0], [1], [0, 0, 1, 1], [], []>} : vector<8x32xf32>, vector<32x32xf32>, vector<8x32xf32> -> vector<8x32xf32>
    %c0_4 = arith.constant 0 : index
    %c0_5 = arith.constant 0 : index
    %10 = vector.load %arg4[%c0_4, %c0_5] : memref<1x32xf32, #tpu.memory_space<vmem>>, vector<1x32xf32>
    %11 = vector.broadcast %10 : vector<1x32xf32> to vector<8x32xf32>
    %12 = arith.addf %9, %11 : vector<8x32xf32>
    %cst_6 = arith.constant 0.353553385 : f32
    %13 = vector.broadcast %cst_6 : f32 to vector<8x32xf32>
    %14 = arith.mulf %12, %13 : vector<8x32xf32>
    %15 = vector.shape_cast %14 : vector<8x32xf32> to vector<8x4x8xf32>
    %16 = tpu.transpose %15, [1, 0, 2] : vector<8x4x8xf32> -> vector<4x8x8xf32>
    %c0_7 = arith.constant 0 : index
    %c0_8 = arith.constant 0 : index
    %c0_9 = arith.constant 0 : index
    %17 = vector.load %arg18[%c0_7, %c0_8, %c0_9] : memref<4x8x8xf32, #tpu.memory_space<vmem>>, vector<4x8x8xf32>
    "tpu.trace_start"() <{level = 10 : i32, message = "hqd,hdk->hqk"}> : () -> ()
    %cst_10 = arith.constant dense<0.000000e+00> : vector<4x8x8xf32>
    %18 = tpu.matmul %16, %17, %cst_10 {dimension_numbers = #tpu.dot_dimension_numbers<[2], [1], [1], [2], [0, 0, 0, 1, 1, 2], [0], [0]>} : vector<4x8x8xf32>, vector<4x8x8xf32>, vector<4x8x8xf32> -> vector<4x8x8xf32>
    "tpu.trace_stop"() : () -> ()
    %cst_11 = arith.constant dense<0xFF800000> : vector<4x8xf32>
    %19 = vector.multi_reduction <maximumf>, %18, %cst_11 [2] : vector<4x8x8xf32> to vector<4x8xf32>
    %20 = vector.shape_cast %19 : vector<4x8xf32> to vector<4x8x1xf32>
    %21 = vector.broadcast %20 : vector<4x8x1xf32> to vector<4x8x8xf32>
    %22 = arith.subf %18, %21 : vector<4x8x8xf32>
    %23 = math.exp %22 : vector<4x8x8xf32>
    %cst_12 = arith.constant dense<0.000000e+00> : vector<4x8xf32>
    %24 = vector.multi_reduction <add>, %23, %cst_12 [2] : vector<4x8x8xf32> to vector<4x8xf32>
    %25 = vector.shape_cast %24 : vector<4x8xf32> to vector<4x8x1xf32>
    %26 = tpu.reciprocal %25 {approx = true} : vector<4x8x1xf32> -> vector<4x8x1xf32>
    %27 = vector.broadcast %26 : vector<4x8x1xf32> to vector<4x8x8xf32>
    %28 = arith.mulf %23, %27 : vector<4x8x8xf32>
    %29 = vector.extract_strided_slice %28 {offsets = [0, 0, 0], sizes = [1, 8, 8], strides = [1, 1, 1]} : vector<4x8x8xf32> to vector<1x8x8xf32>
    %30 = vector.shape_cast %29 : vector<1x8x8xf32> to vector<8x8xf32>
    %c0_13 = arith.constant 0 : index
    %c0_14 = arith.constant 0 : index
    %31 = vector.load %arg19[%c0_13, %c0_14] : memref<8x32xf32, #tpu.memory_space<vmem>>, vector<8x8xf32>
    %cst_15 = arith.constant dense<0.000000e+00> : vector<8x8xf32>
    %32 = tpu.matmul %30, %31, %cst_15 {dimension_numbers = #tpu.dot_dimension_numbers<[1], [0], [0], [1], [0, 0, 1, 1], [], []>} : vector<8x8xf32>, vector<8x8xf32>, vector<8x8xf32> -> vector<8x8xf32>
    %c0_16 = arith.constant 0 : index
    %c0_17 = arith.constant 0 : index
    %33 = vector.load %arg20[%c0_16, %c0_17] : memref<8x32xf32, #tpu.memory_space<vmem>>, vector<8x8xf32>
    tpu.vector_store %arg20[%c0_16, %c0_17], %32 {strides = array<i32>} : memref<8x32xf32, #tpu.memory_space<vmem>>, vector<8x8xf32>,
    %34 = vector.extract_strided_slice %28 {offsets = [1, 0, 0], sizes = [1, 8, 8], strides = [1, 1, 1]} : vector<4x8x8xf32> to vector<1x8x8xf32>
    %35 = vector.shape_cast %34 : vector<1x8x8xf32> to vector<8x8xf32>
    %c0_18 = arith.constant 0 : index
    %c8 = arith.constant 8 : index
    %36 = vector.load %arg19[%c0_18, %c8] : memref<8x32xf32, #tpu.memory_space<vmem>>, vector<8x8xf32>
    %cst_19 = arith.constant dense<0.000000e+00> : vector<8x8xf32>
    %37 = tpu.matmul %35, %36, %cst_19 {dimension_numbers = #tpu.dot_dimension_numbers<[1], [0], [0], [1], [0, 0, 1, 1], [], []>} : vector<8x8xf32>, vector<8x8xf32>, vector<8x8xf32> -> vector<8x8xf32>
    %c0_20 = arith.constant 0 : index
    %c8_21 = arith.constant 8 : index
    %38 = vector.load %arg20[%c0_20, %c8_21] : memref<8x32xf32, #tpu.memory_space<vmem>>, vector<8x8xf32>
    tpu.vector_store %arg20[%c0_20, %c8_21], %37 {strides = array<i32>} : memref<8x32xf32, #tpu.memory_space<vmem>>, vector<8x8xf32>,
    %39 = vector.extract_strided_slice %28 {offsets = [2, 0, 0], sizes = [1, 8, 8], strides = [1, 1, 1]} : vector<4x8x8xf32> to vector<1x8x8xf32>
    %40 = vector.shape_cast %39 : vector<1x8x8xf32> to vector<8x8xf32>
    %c0_22 = arith.constant 0 : index
    %c16 = arith.constant 16 : index
    %41 = vector.load %arg19[%c0_22, %c16] : memref<8x32xf32, #tpu.memory_space<vmem>>, vector<8x8xf32>
    %cst_23 = arith.constant dense<0.000000e+00> : vector<8x8xf32>
    %42 = tpu.matmul %40, %41, %cst_23 {dimension_numbers = #tpu.dot_dimension_numbers<[1], [0], [0], [1], [0, 0, 1, 1], [], []>} : vector<8x8xf32>, vector<8x8xf32>, vector<8x8xf32> -> vector<8x8xf32>
    %c0_24 = arith.constant 0 : index
    %c16_25 = arith.constant 16 : index
    %43 = vector.load %arg20[%c0_24, %c16_25] : memref<8x32xf32, #tpu.memory_space<vmem>>, vector<8x8xf32>
    tpu.vector_store %arg20[%c0_24, %c16_25], %42 {strides = array<i32>} : memref<8x32xf32, #tpu.memory_space<vmem>>, vector<8x8xf32>,
    %44 = vector.extract_strided_slice %28 {offsets = [3, 0, 0], sizes = [1, 8, 8], strides = [1, 1, 1]} : vector<4x8x8xf32> to vector<1x8x8xf32>
    %45 = vector.shape_cast %44 : vector<1x8x8xf32> to vector<8x8xf32>
    %c0_26 = arith.constant 0 : index
    %c24 = arith.constant 24 : index
    %46 = vector.load %arg19[%c0_26, %c24] : memref<8x32xf32, #tpu.memory_space<vmem>>, vector<8x8xf32>
    %cst_27 = arith.constant dense<0.000000e+00> : vector<8x8xf32>
    %47 = tpu.matmul %45, %46, %cst_27 {dimension_numbers = #tpu.dot_dimension_numbers<[1], [0], [0], [1], [0, 0, 1, 1], [], []>} : vector<8x8xf32>, vector<8x8xf32>, vector<8x8xf32> -> vector<8x8xf32>
    %c0_28 = arith.constant 0 : index
    %c24_29 = arith.constant 24 : index
    %48 = vector.load %arg20[%c0_28, %c24_29] : memref<8x32xf32, #tpu.memory_space<vmem>>, vector<8x8xf32>
    tpu.vector_store %arg20[%c0_28, %c24_29], %47 {strides = array<i32>} : memref<8x32xf32, #tpu.memory_space<vmem>>, vector<8x8xf32>,
    %c0_30 = arith.constant 0 : index
    %c0_31 = arith.constant 0 : index
    %49 = vector.load %arg20[%c0_30, %c0_31] : memref<8x32xf32, #tpu.memory_space<vmem>>, vector<8x32xf32>
    %50 = arith.addf %49, %7 : vector<8x32xf32>
    %c0_32 = arith.constant 0 : index
    %c0_33 = arith.constant 0 : index
    %51 = vector.load %arg9[%c0_32, %c0_33] : memref<1x32xf32, #tpu.memory_space<vmem>>, vector<1x32xf32>
    %c0_34 = arith.constant 0 : index
    %c0_35 = arith.constant 0 : index
    %52 = vector.load %arg10[%c0_34, %c0_35] : memref<1x32xf32, #tpu.memory_space<vmem>>, vector<1x32xf32>
    %cst_36 = arith.constant dense<0.000000e+00> : vector<8xf32>
    %53 = vector.multi_reduction <add>, %50, %cst_36 [1] : vector<8x32xf32> to vector<8xf32>
    %54 = vector.shape_cast %53 : vector<8xf32> to vector<8x1xf32>
    %55 = arith.mulf %50, %50 : vector<8x32xf32>
    %cst_37 = arith.constant dense<0.000000e+00> : vector<8xf32>
    %56 = vector.multi_reduction <add>, %55, %cst_37 [1] : vector<8x32xf32> to vector<8xf32>
    %57 = vector.shape_cast %56 : vector<8xf32> to vector<8x1xf32>
    %cst_38 = arith.constant 3.125000e-02 : f32
    %58 = vector.broadcast %cst_38 : f32 to vector<8x1xf32>
    %59 = arith.mulf %54, %58 : vector<8x1xf32>
    %cst_39 = arith.constant 3.125000e-02 : f32
    %60 = vector.broadcast %cst_39 : f32 to vector<8x1xf32>
    %61 = arith.mulf %57, %60 : vector<8x1xf32>
    %62 = arith.mulf %59, %59 : vector<8x1xf32>
    %63 = arith.subf %61, %62 : vector<8x1xf32>
    %cst_40 = arith.constant 0.000000e+00 : f32
    %64 = vector.broadcast %cst_40 : f32 to vector<8x1xf32>
    %65 = arith.maximumf %63, %64 : vector<8x1xf32>
    %66 = vector.broadcast %59 : vector<8x1xf32> to vector<8x32xf32>
    %67 = arith.subf %50, %66 : vector<8x32xf32>
    %cst_41 = arith.constant 9.99999974E-6 : f32
    %68 = vector.broadcast %cst_41 : f32 to vector<8x1xf32>
    %69 = arith.addf %65, %68 : vector<8x1xf32>
    %70 = math.rsqrt %69 : vector<8x1xf32>
    %71 = vector.broadcast %70 : vector<8x1xf32> to vector<8x32xf32>
    %72 = arith.mulf %67, %71 : vector<8x32xf32>
    %73 = vector.broadcast %51 : vector<1x32xf32> to vector<8x32xf32>
    %74 = arith.mulf %72, %73 : vector<8x32xf32>
    %75 = vector.broadcast %52 : vector<1x32xf32> to vector<8x32xf32>
    %76 = arith.addf %74, %75 : vector<8x32xf32>
    %c0_42 = arith.constant 0 : index
    %c0_43 = arith.constant 0 : index
    %77 = vector.load %arg11[%c0_42, %c0_43] : memref<32x64xf32, #tpu.memory_space<vmem>>, vector<32x64xf32>
    %cst_44 = arith.constant dense<0.000000e+00> : vector<8x64xf32>
    %78 = tpu.matmul %76, %77, %cst_44 {dimension_numbers = #tpu.dot_dimension_numbers<[1], [0], [0], [1], [0, 0, 1, 1], [], []>} : vector<8x32xf32>, vector<32x64xf32>, vector<8x64xf32> -> vector<8x64xf32>
    %c0_45 = arith.constant 0 : index
    %c0_46 = arith.constant 0 : index
    %79 = vector.load %arg12[%c0_45, %c0_46] : memref<1x64xf32, #tpu.memory_space<vmem>>, vector<1x64xf32>
    %80 = vector.broadcast %79 : vector<1x64xf32> to vector<8x64xf32>
    %81 = arith.addf %78, %80 : vector<8x64xf32>
    %cst_47 = arith.constant 0.000000e+00 : f32
    %82 = vector.broadcast %cst_47 : f32 to vector<8x64xf32>
    %83 = arith.maximumf %81, %82 : vector<8x64xf32>
    %c0_48 = arith.constant 0 : index
    %c0_49 = arith.constant 0 : index
    %84 = vector.load %arg13[%c0_48, %c0_49] : memref<64x32xf32, #tpu.memory_space<vmem>>, vector<64x32xf32>
    %cst_50 = arith.constant dense<0.000000e+00> : vector<8x32xf32>
    %85 = tpu.matmul %83, %84, %cst_50 {dimension_numbers = #tpu.dot_dimension_numbers<[1], [0], [0], [1], [0, 0, 1, 1], [], []>} : vector<8x64xf32>, vector<64x32xf32>, vector<8x32xf32> -> vector<8x32xf32>
    %c0_51 = arith.constant 0 : index
    %c0_52 = arith.constant 0 : index
    %86 = vector.load %arg14[%c0_51, %c0_52] : memref<1x32xf32, #tpu.memory_space<vmem>>, vector<1x32xf32>
    %87 = vector.broadcast %86 : vector<1x32xf32> to vector<8x32xf32>
    %88 = arith.addf %85, %87 : vector<8x32xf32>
    %89 = arith.addf %88, %76 : vector<8x32xf32>
    %c0_53 = arith.constant 0 : index
    %c0_54 = arith.constant 0 : index
    %90 = vector.load %arg15[%c0_53, %c0_54] : memref<1x32xf32, #tpu.memory_space<vmem>>, vector<1x32xf32>
    %c0_55 = arith.constant 0 : index
    %c0_56 = arith.constant 0 : index
    %91 = vector.load %arg16[%c0_55, %c0_56] : memref<1x32xf32, #tpu.memory_space<vmem>>, vector<1x32xf32>
    %cst_57 = arith.constant dense<0.000000e+00> : vector<8xf32>
    %92 = vector.multi_reduction <add>, %89, %cst_57 [1] : vector<8x32xf32> to vector<8xf32>
    %93 = vector.shape_cast %92 : vector<8xf32> to vector<8x1xf32>
    %94 = arith.mulf %89, %89 : vector<8x32xf32>
    %cst_58 = arith.constant dense<0.000000e+00> : vector<8xf32>
    %95 = vector.multi_reduction <add>, %94, %cst_58 [1] : vector<8x32xf32> to vector<8xf32>
    %96 = vector.shape_cast %95 : vector<8xf32> to vector<8x1xf32>
    %cst_59 = arith.constant 3.125000e-02 : f32
    %97 = vector.broadcast %cst_59 : f32 to vector<8x1xf32>
    %98 = arith.mulf %93, %97 : vector<8x1xf32>
    %cst_60 = arith.constant 3.125000e-02 : f32
    %99 = vector.broadcast %cst_60 : f32 to vector<8x1xf32>
    %100 = arith.mulf %96, %99 : vector<8x1xf32>
    %101 = arith.mulf %98, %98 : vector<8x1xf32>
    %102 = arith.subf %100, %101 : vector<8x1xf32>
    %cst_61 = arith.constant 0.000000e+00 : f32
    %103 = vector.broadcast %cst_61 : f32 to vector<8x1xf32>
    %104 = arith.maximumf %102, %103 : vector<8x1xf32>
    %105 = vector.broadcast %98 : vector<8x1xf32> to vector<8x32xf32>
    %106 = arith.subf %89, %105 : vector<8x32xf32>
    %cst_62 = arith.constant 9.99999974E-6 : f32
    %107 = vector.broadcast %cst_62 : f32 to vector<8x1xf32>
    %108 = arith.addf %104, %107 : vector<8x1xf32>
    %109 = math.rsqrt %108 : vector<8x1xf32>
    %110 = vector.broadcast %109 : vector<8x1xf32> to vector<8x32xf32>
    %111 = arith.mulf %106, %110 : vector<8x32xf32>
    %112 = vector.broadcast %90 : vector<1x32xf32> to vector<8x32xf32>
    %113 = arith.mulf %111, %112 : vector<8x32xf32>
    %114 = vector.broadcast %91 : vector<1x32xf32> to vector<8x32xf32>
    %115 = arith.addf %113, %114 : vector<8x32xf32>
    %c0_63 = arith.constant 0 : index
    %c0_64 = arith.constant 0 : index
    %c0_65 = arith.constant 0 : index
    %116 = vector.load %arg17[%c0_63, %c0_64, %c0_65] : memref<1x8x32xf32, #tpu.memory_space<vmem>>, vector<1x8x32xf32>
    %117 = vector.shape_cast %116 : vector<1x8x32xf32> to vector<8x32xf32>
    %118 = vector.shape_cast %115 : vector<8x32xf32> to vector<1x8x32xf32>
    tpu.vector_store %arg17[%c0_63, %c0_64, %c0_65], %118 {strides = array<i32>} : memref<1x8x32xf32, #tpu.memory_space<vmem>>, vector<1x8x32xf32>,
    return
  }
  func.func @transform_0(%arg0: i32, %arg1: i32) -> (i32, i32, i32) {
    %c0_i32 = arith.constant 0 : i32
    %c0_i32_0 = arith.constant 0 : i32
    %c0_i32_1 = arith.constant 0 : i32
    return %arg0, %c0_i32, %c0_i32_0 : i32, i32, i32
  }
  func.func @transform_1(%arg0: i32, %arg1: i32) -> (i32, i32) {
    %c0_i32 = arith.constant 0 : i32
    %c0_i32_0 = arith.constant 0 : i32
    %c0_i32_1 = arith.constant 0 : i32
    return %c0_i32, %c0_i32_0 : i32, i32
  }
  func.func @transform_2(%arg0: i32, %arg1: i32) -> (i32, i32) {
    %c0_i32 = arith.constant 0 : i32
    %c0_i32_0 = arith.constant 0 : i32
    %c0_i32_1 = arith.constant 0 : i32
    return %c0_i32, %c0_i32_0 : i32, i32
  }
  func.func @transform_3(%arg0: i32, %arg1: i32) -> (i32, i32) {
    %c0_i32 = arith.constant 0 : i32
    %c0_i32_0 = arith.constant 0 : i32
    %c0_i32_1 = arith.constant 0 : i32
    return %c0_i32, %c0_i32_0 : i32, i32
  }
  func.func @transform_4(%arg0: i32, %arg1: i32) -> (i32, i32) {
    %c0_i32 = arith.constant 0 : i32
    %c0_i32_0 = arith.constant 0 : i32
    %c0_i32_1 = arith.constant 0 : i32
    return %c0_i32, %c0_i32_0 : i32, i32
  }
  func.func @transform_5(%arg0: i32, %arg1: i32) -> (i32, i32) {
    %c0_i32 = arith.constant 0 : i32
    %c0_i32_0 = arith.constant 0 : i32
    %c0_i32_1 = arith.constant 0 : i32
    return %c0_i32, %c0_i32_0 : i32, i32
  }
  func.func @transform_6(%arg0: i32, %arg1: i32) -> (i32, i32) {
    %c0_i32 = arith.constant 0 : i32
    %c0_i32_0 = arith.constant 0 : i32
    %c0_i32_1 = arith.constant 0 : i32
    return %c0_i32, %c0_i32_0 : i32, i32
  }
  func.func @transform_7(%arg0: i32, %arg1: i32) -> (i32, i32) {
    %c0_i32 = arith.constant 0 : i32
    %c0_i32_0 = arith.constant 0 : i32
    %c0_i32_1 = arith.constant 0 : i32
    return %c0_i32, %c0_i32_0 : i32, i32
  }
  func.func @transform_8(%arg0: i32, %arg1: i32) -> (i32, i32) {
    %c0_i32 = arith.constant 0 : i32
    %c0_i32_0 = arith.constant 0 : i32
    %c0_i32_1 = arith.constant 0 : i32
    return %c0_i32, %c0_i32_0 : i32, i32
  }
  func.func @transform_9(%arg0: i32, %arg1: i32) -> (i32, i32) {
    %c0_i32 = arith.constant 0 : i32
    %c0_i32_0 = arith.constant 0 : i32
    %c0_i32_1 = arith.constant 0 : i32
    return %c0_i32, %c0_i32_0 : i32, i32
  }
  func.func @transform_10(%arg0: i32, %arg1: i32) -> (i32, i32) {
    %c0_i32 = arith.constant 0 : i32
    %c0_i32_0 = arith.constant 0 : i32
    %c0_i32_1 = arith.constant 0 : i32
    return %c0_i32, %c0_i32_0 : i32, i32
  }
  func.func @transform_11(%arg0: i32, %arg1: i32) -> (i32, i32) {
    %c0_i32 = arith.constant 0 : i32
    %c0_i32_0 = arith.constant 0 : i32
    %c0_i32_1 = arith.constant 0 : i32
    return %c0_i32, %c0_i32_0 : i32, i32
  }
  func.func @transform_12(%arg0: i32, %arg1: i32) -> (i32, i32) {
    %c0_i32 = arith.constant 0 : i32
    %c0_i32_0 = arith.constant 0 : i32
    %c0_i32_1 = arith.constant 0 : i32
    return %c0_i32, %c0_i32_0 : i32, i32
  }
  func.func @transform_13(%arg0: i32, %arg1: i32) -> (i32, i32) {
    %c0_i32 = arith.constant 0 : i32
    %c0_i32_0 = arith.constant 0 : i32
    %c0_i32_1 = arith.constant 0 : i32
    return %c0_i32, %c0_i32_0 : i32, i32
  }
  func.func @transform_14(%arg0: i32, %arg1: i32) -> (i32, i32) {
    %c0_i32 = arith.constant 0 : i32
    %c0_i32_0 = arith.constant 0 : i32
    %c0_i32_1 = arith.constant 0 : i32
    return %c0_i32, %c0_i32_0 : i32, i32
  }
  func.func @transform_15(%arg0: i32, %arg1: i32) -> (i32, i32, i32) {
    %c0_i32 = arith.constant 0 : i32
    %c0_i32_0 = arith.constant 0 : i32
    return %arg0, %arg1, %c0_i32 : i32, i32, i32
  }
}

</mosaic_0001>

<bundles_post_ra>
// kernel: tpu_custom_call.1
= control target key start
LH: loop header
LB: loop body
LE: loop exit
PB: predicated region body
PF: predicated region fallthrough
CT: control target
= control target key end

     0   :  { %s2791_s0 = inlined_call_operand.vmem [shape: f32[2,8,32], index: 0, kind: input, shape index: {}]   ;;  %s2792_s1 = inlined_call_operand.vmem [shape: f32[32,32], index: 1, kind: input, shape index: {}]   ;;  %s2793_s2 = inlined_call_operand.vmem [shape: f32[1,32], index: 2, kind: input, shape index: {}]   ;;  %s2794_s3 = inlined_call_operand.vmem [shape: f32[32,32], index: 3, kind: input, shape index: {}]   ;;  %s2795_s4 = inlined_call_operand.vmem [shape: f32[32,1], index: 4, kind: input, shape index: {}]   ;;  %s2796_s5 = inlined_call_operand.vmem [shape: f32[32,32], index: 5, kind: input, shape index: {}]   ;;  %s2797_s6 = inlined_call_operand.vmem [shape: f32[1,32], index: 6, kind: input, shape index: {}]   ;;  %s2798_s7 = inlined_call_operand.vmem [shape: f32[1,32], index: 7, kind: input, shape index: {}]   ;;  %s2799_s8 = inlined_call_operand.vmem [shape: f32[1,32], index: 8, kind: input, shape index: {}]   ;;  %s2800_s9 = inlined_call_operand.hbm [shape: f32[32,64], index: 9, kind: input, shape index: {}]   ;;  %s2801_s10 = inlined_call_operand.vmem [shape: f32[1,64], index: 10, kind: input, shape index: {}]   ;;  %s2802_s11 = inlined_call_operand.vmem [shape: f32[64,32], index: 11, kind: input, shape index: {}]   ;;  %s2803_s12 = inlined_call_operand.vmem [shape: f32[1,32], index: 12, kind: input, shape index: {}]   ;;  %s2804_s13 = inlined_call_operand.vmem [shape: f32[1,32], index: 13, kind: input, shape index: {}]   ;;  %s2805_s14 = inlined_call_operand.vmem [shape: f32[1,32], index: 14, kind: input, shape index: {}]   ;;  %s2806_s15 = inlined_call_operand.hbm [shape: f32[2,8,32], index: 15, kind: output, shape index: {}]  }
   0x1   :  { %2811 = sst [smem:[#allocation16_spill]] %s2791_s0 }
   0x2   :  { %2812 = sst [smem:[#allocation17_spill]] %s2792_s1 }
   0x3   :  { %2813 = sst [smem:[#allocation18_spill]] %s2800_s9 }
   0x4   :  { %20 = vsyncpa [#allocation6], 0 }
   0x5   :  { %21 = vsyncpa [#allocation7], 0 }
   0x6   :  { %23 = vsyncpa [#allocation7 + $0x1], 0  ;;  %s2471_s18 = smov 0   ;;  %s2473_s19 = smov 0  }
   0x7   :  { %s2475_s20 = smov 0   ;;  %s2477_s21 = smov 0  }
   0x8   :  { %s2479_s22 = smov 0   ;;  %s2481_s23 = smov 0  }
   0x9 LB: > { %2814 = sst [smem:[#allocation11_spill]] %s2354_s18  ;;  %s1982_s24 = sadd.s32 4294967295, %s2374_s23   ;;  %s2374_s23 = sphi %s2481_s23, %s29_s23   ;;  %s2370_s22 = sphi %s2479_s22, %s2830_s22   ;;  %s2366_s21 = sphi %s2477_s21, %s2829_s21   ;;  %s2362_s20 = sphi %s2475_s20, %s2828_s20   ;;  %s2358_s19 = sphi %s2473_s19, %s2832_s19   ;;  %s2354_s18 = sphi %s2471_s18, %s2831_s18  }
   0xa   : > { %2815 = sst [smem:[#allocation12_spill]] %s2362_s20  ;;  %s1983_s25 = sadd.s32 4294967294, %s2374_s23  }
   0xb   : > { %2816 = sst [smem:[#allocation13_spill]] %s2370_s22  ;;  %s41_s26 = sadd.s32 1, %s2370_s22 }
   0xc   : > { %s370_s27 = sadd.s32 1, %s2362_s20  ;;  %p43_p0 = scmp.ge.s32.totalorder %s41_s26, 2 }
   0xd   : > { %p380_p1 = scmp.ne.s32.totalorder %s2362_s20, %s2358_s19  ;;  %p381_p2 = scmp.eq.s32.totalorder %s1982_s24, 1 }
   0xe   : > { %p386_p3 = scmp.ne.s32.totalorder %s2358_s19, %s2354_s18  ;;  %s2834_s26 = smov (%p43_p0, %s41_s26), 0 }
   0xf   : > { %2817 = sst [smem:[#allocation14_spill]] %s2834_s26  ;;  %p2511_p4 = por %p381_p2, %p380_p1 }
  0x10   : > { %p387_p5 = scmp.eq.s32.totalorder %s1983_s25, 1  ;;  %s365_s29 = ssub.s32 %s2370_s22, %s2834_s26 }
  0x11   : > { %p1984_p6 = scmp.ge.s32.totalorder %s2374_s23, 1  ;;  %p368_p7 = scmp.eq.s32.totalorder %s365_s29, 0 }
  0x12   : > { %p2518_p8 = por %p387_p5, %p386_p3  ;;  %p394_p9 = scmp.lt.s32.totalorder %s2374_s23, 3 }
  0x13   : > { %s2524_s16 = scalar_select %p368_p7, %s2362_s20, %s370_s27  }
  0x14   : > { %p2526_p10 = pnand %p1984_p6, %p394_p9  ;;  %p2530_p11 = scmp.eq.s32.totalorder %s1982_s24, 0 }
  0x15   : > { %2820 = sst [smem:[#allocation15_spill]] %s2524_s16  ;;  %s2376_s25 = smov [#allocation5]  }
  0x16   : > { %p2173_p12 = pneg %p2526_p10  ;;  %s430_s29 = sshll.u32 %s2376_s25, 4  ;;  %s431_s29 = int_to_ptr.vmem [resolvable:$true] %s430_s29 }
  0x17   : > { %s2279_s27 = scalar_lea.vmem %s431_s29, 512  ;;  %p2287_p5 = scmp.lt.s32.totalorder %s431_s29, %s431_s29 }
  0x18   : > { %p2174_p13 = pnand %p2530_p11, %p2173_p12  ;;  %p2280_p1 = scmp.ne.s32.totalorder %s431_s29, %s2279_s27 }
  0x19   : > { %p2288_p6 = scmp.lt.s32.totalorder %s2279_s27, %s2279_s27 }
  0x1a   : > { %p2270_p0 = pneg %p2174_p13 }
  0x1b   : > { %p2289_p7 = por %p2288_p6, %p2287_p5 }
  0x1c   : > { %p2282_p2 = pnand %p2280_p1, %p2270_p0 }
  0x1e   : > { %p2283_p3 = pneg %p2282_p2 }
  0x20   : > { %p2290_p9 = pnand %p2289_p7, %p2283_p3 }
  0x22   : > { %2293 = shalt.err (!%p2290_p9)
}
  0x23   : > { %s2377_s24 = smov 128   ;;  %s2378_s26 = smov 8  }
  0x24   : > { %s2823_s9 = sld [smem:[#allocation18_spill]] }
  0x26   : > { %468 = sbr.rel (%p2526_p10) target bundleno = 1975 (0x7b7), region = 80 }
  0x2a   : > { %2176 = dma.hbm_to_vmem [thread:$0]  (!%p2174_p13), %s2823_s9, 512, %s431_s29, [#allocation6], %s2377_s24, %s2377_s24, %s2378_s26  }
  0x2b   : > { %2345 = dma.done.wait (%p2530_p11), [#allocation6], 512  }
  0x2c   : > { %2347 = vsyncadd (%p2530_p11), [#allocation6], 4294966784  ;;  %p515_p12 = scmp.lt.s32.totalorder %s2366_s21, 1  ;;  %v2379_v0 = vmov 0.0   ;;  %vm2380_vm0 = vmmov 0   ;;  %v2381_v1 = vmov 0   ;;  %v844_v31 = vlaneseq }
  0x2d   : > { %2086 = vmatprep.subr.mxu0 %v2379_v0  ;;  %2094 = vmatprep.mubr.msk.f32.mxu0 %vm2380_vm0, %v2379_v0  ;;  %s2824_s0 = sld [smem:[#allocation16_spill]]  ;;  %vm552_vm1 = vcmask 261120   ;;  %v524_v5 = vld [vmem:[%s2794_s3] sm:$0xff]  ;;  %v525_v7 = vld [vmem:[%s2794_s3 + $0x8] sm:$0xff]  ;;  %v526_v10 = vld [vmem:[%s2794_s3 + $0x10] sm:$0xff]  ;;  %vm734_vm2 = vcmask 64512  }
  0x2e   : > { %s516_s22 = scalar_select %p515_p12, %s2366_s21, 1  ;;  %2246 = vset.pattern.permute.xlu1 %v2381_v1  ;;  %2247 = vset.pattern.permute.xlu0 %v2381_v1  ;;  %v528_v8 = vld [vmem:[%s2795_s4] sm:$0xff]  ;;  %v527_v11 = vld [vmem:[%s2794_s3 + $0x18] sm:$0xff]  ;;  %v655_v13 = vld [vmem:[%s2796_s5 + $0x10] sm:$0xff]  ;;  %v2385_v29 = vmov 1983009808  }
  0x2f   : > { %s2825_s1 = sld [smem:[#allocation17_spill]]  ;;  %2069 = vmatprep.mubr.msk.f32.mxu1 %vm552_vm1, %v524_v5  ;;  %534 = vperm.xlu1 %2246, %v528_v8   ;;  %v656_v12 = vld [vmem:[%s2796_s5 + $0x18] sm:$0xff]  ;;  %v1998_v14 = vld [vmem:[%s2793_s2] ss:$0 sm:$0xff]  ;;  %v654_v17 = vld [vmem:[%s2796_s5 + $0x8] sm:$0xff]  ;;  %v842_v30 = vunpack.c.l.s4 %v2385_v29  ;;  %v845_v35 = vshrl.u32 %v844_v31, 7 }
  0x30   : > { %s1990_s26 = sshll.u32 %s516_s22, 3  ;;  %v653_v22 = vld [vmem:[%s2796_s5] sm:$0xff]  ;;  %s2382_s22 = smov 120   ;;  %v530_v25 = vld [vmem:[%s2795_s4 + $0x10] sm:$0xff]  ;;  %v529_v26 = vld [vmem:[%s2795_s4 + $0x8] sm:$0xff]  ;;  %vm1473_vm3 = vcmask 130112  }
  0x31   : > { %v531_v27 = vld [vmem:[%s2795_s4 + $0x18] sm:$0xff]  ;;  %v2386_v32 = vmov 1934713408   ;;  %v843_v34 = vunpack.c.0.s8 %v842_v30  ;;  %s2389_s16 = smov 24   ;;  %vm1557_vm4 = vcmask 195712   ;;  %vm1641_vm5 = vcmask 261312  }
  0x32   : > { %v874_v33 = vunpack.c.l.s4 %v2386_v32  ;;  %vm1777_vm6 = vcmask 523264   ;;  %s512_s9 = sand.u32 1, %s2358_s19   ;;  %s2390_s29 = smov [#allocation8]  }
  0x33   : > { %s518_s18 = scalar_lea.vmem %s2824_s0, %s1990_s26  ;;  %s2383_s26 = smov 104   ;;  %v846_v39 = vsub.s32 %v843_v34, %v845_v35 }
  0x34   : > { %v2561_v4 = vld [vmem:[%s518_s18] sm:$0xff]  ;;  %s2384_s18 = smov 112   ;;  %v875_v38 = vunpack.c.0.s8 %v874_v33  ;;  %s1989_s20 = sshll.u32 %s512_s9, 3 }
  0x35   : > { %v746_v2 = vld [vmem:[%s2825_s1 + $0x18] sm:$0xff]  ;;  %v745_v3 = vld [vmem:[%s2825_s1 + $0x10] sm:$0xff]  ;;  %v744_v6 = vld [vmem:[%s2825_s1 + $0x8] sm:$0xff]  ;;  %2067 = vmatprep.subr.msk.mxu1 %vm552_vm1, %v2561_v4  ;;  %s2298_s27 = sshll.u32 %s2390_s29, 4  ;;  %s2299_s27 = int_to_ptr.vmem [resolvable:$false] %s2298_s27 }
  0x36   : > { %2087 = vmatpush3.msra.mxu0 %v746_v2  ;;  %2068 = vmatpush3.xpose.msk.msra.mxu1 %vm552_vm1, %v2561_v4  ;;  %v743_v9 = vld [vmem:[%s2825_s1] sm:$0xff]  ;;  %v878_v45 = vsub.s32 %v875_v38, %v845_v35  ;;  %s1886_s1 = scalar_lea.sflag [#allocation7], %s512_s9 }
  0x37   : > { %2088 = vmatprep.subr.mxu0 %v2379_v0  ;;  %2075 = vmatprep.subr.mxu1 %v2379_v0 }
  0x38   : > { %2089 = vmatpush3.msra.mxu0 %v745_v3 }
  0x39   : > { %2090 = vmatprep.subr.mxu0 %v2379_v0  ;;  %2070 = vmatmul.mubr.msk.f32.vlgmr.msra.gmra.mxu1 %vm552_vm1, %v525_v7 }
  0x3a   : > { %2091 = vmatpush3.msra.mxu0 %v744_v6  ;;  %2072 = vmatprep.mubr.msk.f32.mxu1 %vm552_vm1, %v526_v10 }
  0x3b   : > { %2092 = vmatprep.subr.mxu0 %v2379_v0  ;;  %2076 = vmatpush3.msra.mxu1 %v656_v12 }
  0x3c   : > { %2093 = vmatpush3.msra.mxu0 %v743_v9  ;;  %2077 = vmatprep.subr.mxu1 %v2379_v0 }
  0x3d   : > { %2095 = vmatmul.mubr.msk.f32.vlgmr.msra.gmra.mxu0 %vm552_vm1, %v2561_v4  ;;  %2102 = vmatprep.subr.mxu0 %v2379_v0 }
  0x3e   : > { %2104 = vmatprep.mubr.msk.f32.mxu0 %vm2380_vm0, %v2379_v0  ;;  %2073 = vmatmul.mubr.msk.f32.gmra.mxu1 %vm552_vm1, %v527_v11 }
  0x3f   : > { %2083 = vmatprep.mubr.msk.f32.mxu1 %vm2380_vm0, %v2379_v0  ;;  %2078 = vmatpush3.msra.mxu1 %v655_v13 }
  0x40   : > { %2079 = vmatprep.subr.mxu1 %v2379_v0 }
  0x41   : > { %2080 = vmatpush3.msra.mxu1 %v654_v17 }
  0x42   : > { %2081 = vmatprep.subr.mxu1 %v2379_v0 }
  0x43   : > { %2082 = vmatpush3.msra.mxu1 %v653_v22 }
  0x44   : > { %2097 = vmatprep.subr.mxu1 %v2379_v0  ;;  %2084 = vmatmul.mubr.msk.f32.vlgmr.msra.gmra.mxu1 %vm552_vm1, %v2561_v4 }
  0x45   : > { %2099 = vmatprep.mubr.msk.f32.mxu1 %vm2380_vm0, %v2379_v0 }
  0xaa   : > { %v535_v16 = vpop.permute.xlu1 %534 }
  0xf9   : > { %v2613_v15 = vpop.f32.mrf.mxu1 }
  0xfb   : > { %v634_v19 = vpop.f32.mrf.mxu1 }
  0xfc   : > { %v635_v21 = vadd.f32 %v634_v19, %v535_v16 }
  0xfd   : > { %v824_v18 = vpop.f32.mrf.mxu0 }
  0xfe   : > { %v825_v20 = vadd.f32 %v1998_v14, %v824_v18  ;;  %735 = vst.msk [vmem:[#allocation2] sm:$0xff] %vm734_vm2, %v635_v21  ;;  %v2074_v50 = vpop.f32.mrf.mxu1 }
  0xff   : > { %v2096_v23 = vpop.f32.mrf.mxu0 }
 0x100   : > { %v828_v24 = vmul.f32 0.35355338, %v825_v20  ;;  %v644_v59 = vpop.f32.mrf.mxu1 }
 0x102   : > { %830 = vrot.lane.b32.xlu0 %v828_v24, %s2382_s22  ;;  %836 = vrot.lane.b32.xlu1 %v828_v24, %s2383_s26 }
 0x105   : > { %v975_v28 = vld [vmem:[#allocation2] sm:$0xff] }
 0x106   : > { %833 = vrot.lane.b32.xlu0 %v828_v24, %s2384_s18  ;;  %544 = vperm.xlu1 %2246, %v530_v25  }
 0x107   : > { %2098 = vmatpush3.msra.mxu1 %v975_v28  ;;  %v730_v28 = vpop.f32.mrf.mxu1 }
 0x108   : > { %2107 = vmatprep.subr.mxu1 %v2379_v0 }
 0x109   : > { %v2085_v30 = vpop.f32.mrf.mxu1 }
 0x10a   : > { %539 = vperm.xlu0 %2247, %v529_v26   ;;  %549 = vperm.xlu1 %2246, %v531_v27   ;;  %v1996_v27 = vld [vmem:[%s2797_s6] ss:$0 sm:$0xff] }
 0x10b   : > { %v731_v29 = vadd.f32 %v1996_v27, %v730_v28 }
 0x10d   : > { %739 = vst.msk [vmem:[#allocation3] sm:$0xff] %vm552_vm1, %v731_v29 }
 0x114   : > { %v1316_v31 = vld [vmem:[#allocation3] sm:$0xff] }
 0x174   : > { %v831_v36 = vpop.permute.xlu0 %830  ;;  %v837_v37 = vpop.permute.xlu1 %836 }
 0x175   : > { %v855_v40 = vcombine.low %v831_v36, %v837_v37  ;;  %v856_v41 = vcombine.high %v831_v36, %v837_v37 }
 0x177   : > { %v863_v46 = vrot.slane %v855_v40, %v846_v39  ;;  %v870_v47 = vrot.slane %v856_v41, %v846_v39 }
 0x178   : > { %v834_v42 = vpop.permute.xlu0 %833 }
 0x179   : > { %v839_v43 = vcombine.low %v828_v24, %v834_v42  ;;  %v840_v44 = vcombine.high %v828_v24, %v834_v42 }
 0x17b   : > { %v847_v48 = vrot.slane %v839_v43, %v846_v39  ;;  %v854_v49 = vrot.slane %v840_v44, %v846_v39 }
 0x17d   : > { %v871_v51 = vcombine.low %v847_v48, %v863_v46  ;;  %v872_v52 = vcombine.high %v847_v48, %v863_v46  ;;  %v887_v53 = vcombine.low %v854_v49, %v870_v47  ;;  %v888_v54 = vcombine.high %v854_v49, %v870_v47 }
 0x17f   : > { %v879_v55 = vrot.slane %v871_v51, %v878_v45  ;;  %v886_v56 = vrot.slane %v872_v52, %v878_v45  ;;  %v895_v57 = vrot.slane %v887_v53, %v878_v45  ;;  %v902_v58 = vrot.slane %v888_v54, %v878_v45 }
 0x181   : > { %v907_v60 = vcombine.low %v879_v55, %v886_v56  ;;  %v2000_v61 = vcombine.high %v879_v55, %v886_v56  ;;  %v923_v62 = vcombine.low %v895_v57, %v902_v58  ;;  %v2001_v63 = vcombine.high %v895_v57, %v902_v58  ;;  %v545_v1 = vpop.permute.xlu1 %544 }
 0x182   : > { %v645_v2 = vadd.f32 %v644_v59, %v545_v1 }
 0x183   : > { %v914_v3 = vrot.slane %v907_v60, %v846_v39  ;;  %v922_v5 = vrot.slane %v2000_v61, %v846_v39  ;;  %v930_v6 = vrot.slane %v923_v62, %v846_v39  ;;  %v938_v7 = vrot.slane %v2001_v63, %v846_v39 }
 0x184   : > { %737 = vst.msk [vmem:[#allocation2 + $0x10] sm:$0xff] %vm734_vm2, %v645_v2 }
 0x185   : > { %v939_v8 = vcombine.low %v914_v3, %v922_v5  ;;  %v940_v9 = vcombine.high %v914_v3, %v922_v5  ;;  %v955_v10 = vcombine.low %v930_v6, %v938_v7  ;;  %v956_v11 = vcombine.high %v930_v6, %v938_v7  ;;  %v540_v12 = vpop.permute.xlu0 %539  ;;  %v550_v13 = vpop.permute.xlu1 %549 }
 0x186   : > { %v640_v14 = vadd.f32 %v2613_v15, %v540_v12  ;;  %v650_v16 = vadd.f32 %v2074_v50, %v550_v13 }
 0x187   : > { %v947_v17 = vrot.slane %v939_v8, %v878_v45  ;;  %v963_v18 = vrot.slane %v955_v10, %v878_v45  ;;  %v954_v20 = vrot.slane %v940_v9, %v878_v45  ;;  %v970_v21 = vrot.slane %v956_v11, %v878_v45 }
 0x188   : > { %736 = vst.msk [vmem:[#allocation2 + $0x8] sm:$0xff] %vm734_vm2, %v640_v14  ;;  %738 = vst.msk [vmem:[#allocation2 + $0x18] sm:$0xff] %vm734_vm2, %v650_v16 }
 0x189   : > { %v971_v19 = vcombine.low %v947_v17, %v963_v18  ;;  %v973_v23 = vcombine.low %v954_v20, %v970_v21  ;;  %v972_v24 = vcombine.high %v947_v17, %v963_v18  ;;  %v974_v26 = vcombine.high %v954_v20, %v970_v21 }
 0x18b   : > { %2100 = vmatmul.mubr.msk.f32.vlgmr.msra.gmra.mxu1 %vm734_vm2, %v971_v19  ;;  %v977_v22 = vld [vmem:[#allocation2 + $0x10] sm:$0xff] }
 0x18c   : > { %2108 = vmatpush3.msra.mxu1 %v977_v22  ;;  %2109 = vmatprep.mubr.msk.f32.mxu1 %vm2380_vm0, %v2379_v0 }
 0x18d   : > { %2117 = vmatprep.subr.mxu1 %v2379_v0 }
 0x18f   : > { %2110 = vmatmul.mubr.msk.f32.vlgmr.msra.gmra.mxu1 %vm734_vm2, %v973_v23  ;;  %v976_v15 = vld [vmem:[#allocation2 + $0x8] sm:$0xff]  ;;  %v978_v25 = vld [vmem:[#allocation2 + $0x18] sm:$0xff] }
 0x190   : > { %2103 = vmatpush3.msra.mxu0 %v976_v15  ;;  %2119 = vmatprep.mubr.msk.f32.mxu1 %vm2380_vm0, %v2379_v0 }
 0x191   : > { %2105 = vmatmul.mubr.msk.f32.vlgmr.msra.gmra.mxu0 %vm734_vm2, %v972_v24  ;;  %2112 = vmatprep.subr.mxu0 %v2379_v0 }
 0x192   : > { %2113 = vmatpush3.msra.mxu0 %v978_v25  ;;  %2114 = vmatprep.mubr.msk.f32.mxu0 %vm2380_vm0, %v2379_v0 }
 0x193   : > { %2122 = vmatprep.subr.mxu0 %v2379_v0  ;;  %2118 = vmatpush3.msra.mxu1 %v1316_v31 }
 0x194   : > { %2127 = vmatprep.subr.mxu1 %v2379_v0 }
 0x195   : > { %2115 = vmatmul.mubr.msk.f32.vlgmr.msra.gmra.mxu0 %vm734_vm2, %v974_v26 }
 0x196   : > { %2124 = vmatprep.mubr.msk.f32.mxu0 %vm2380_vm0, %v2379_v0 }
 0x24b   : > { %v1049_v32 = vpop.f32.mrf.mxu1 }
 0x24c   : > { %v1272_v33 = vsel %vm734_vm2, %v1049_v32, -inf }
 0x24d   : > { %1273 = vmax.xlane.f32.xlu0 %v1272_v33  ;;  %v2101_v34 = vpop.f32.mrf.mxu1  ;;  %v1680_v33 = vld [vmem:[#allocation5 + $0x18] sm:$0xff] }
 0x24e   : > { %v1679_v34 = vld [vmem:[#allocation5 + $0x10] sm:$0xff] }
 0x24f   : > { %v1195_v35 = vpop.f32.mrf.mxu1 }
 0x250   : > { %v1278_v36 = vsel %vm734_vm2, %v1195_v35, -inf }
 0x251   : > { %v1122_v37 = vpop.f32.mrf.mxu0  ;;  %1279 = vmax.xlane.f32.xlu0 %v1278_v36  ;;  %v2111_v38 = vpop.f32.mrf.mxu1  ;;  %v1677_v36 = vld [vmem:[#allocation5] sm:$0xff] }
 0x252   : > { %v1275_v39 = vsel %vm734_vm2, %v1122_v37, -inf  ;;  %v1767_v38 = vld [vmem:[%s2802_s11 + $0x28] sm:$0xff] }
 0x253   : > { %1276 = vmax.xlane.f32.xlu1 %v1275_v39  ;;  %v2106_v40 = vpop.f32.mrf.mxu0  ;;  %v1766_v39 = vld [vmem:[%s2802_s11 + $0x20] sm:$0xff] }
 0x254   : > { %v1765_v40 = vld [vmem:[%s2802_s11 + $0x18] sm:$0xff] }
 0x255   : > { %v1268_v41 = vpop.f32.mrf.mxu0 }
 0x256   : > { %v1281_v42 = vsel %vm734_vm2, %v1268_v41, -inf }
 0x257   : > { %v2116_v43 = vpop.f32.mrf.mxu0  ;;  %1282 = vmax.xlane.f32.xlu0 %v1281_v42 }
 0x264   : > { %1393 = vrot.lane.b32.xlu1 %v1316_v31, %s2382_s22  ;;  %s2387_s22 = smov 16  }
 0x2d6   : > { %v1274_v44 = vpop.xlane.xlu0 %1273 }
 0x2d7   : > { %v1284_v45 = vsub.f32 %v1049_v32, %v1274_v44 }
 0x2d9   : > { %v1288_v46 = vmul.f32 1.442695, %v1284_v45 }
 0x2da   : > { %v1280_v47 = vpop.xlane.xlu0 %1279 }
 0x2db   : > { %2248 = vpow2.f32 %v1288_v46  ;;  %v1286_v48 = vsub.f32 %v1195_v35, %v1280_v47  ;;  %v1678_v35 = vld [vmem:[#allocation5 + $0x8] sm:$0xff] }
 0x2dc   : > { %v1277_v49 = vpop.xlane.xlu1 %1276 }
 0x2dd   : > { %v1292_v50 = vmul.f32 1.442695, %v1286_v48  ;;  %v1285_v51 = vsub.f32 %v1122_v37, %v1277_v49  ;;  %v1768_v37 = vld [vmem:[%s2802_s11 + $0x30] sm:$0xff] }
 0x2df   : > { %2250 = vpow2.f32 %v1292_v50  ;;  %v1290_v52 = vmul.f32 1.442695, %v1285_v51  ;;  %v2010_v51 = vld [vmem:[%s2798_s7] ss:$0 sm:$0xff] }
 0x2e0   : > { %v1394_v53 = vpop.permute.xlu1 %1393  ;;  %v1283_v54 = vpop.xlane.xlu0 %1282 }
 0x2e1   : > { %2252 = vpow2.f32 %v1290_v52  ;;  %v1287_v55 = vsub.f32 %v1268_v41, %v1283_v54  ;;  %2123 = vmatpush3.msra.mxu0 %v1394_v53  ;;  %v2011_v53 = vld [vmem:[%s2799_s8] ss:$0 sm:$0xff] }
 0x2e2   : > { %2132 = vmatprep.subr.mxu0 %v2379_v0 }
 0x2e3   : > { %v1294_v56 = vmul.f32 1.442695, %v1287_v55 }
 0x2e5   : > { %2254 = vpow2.f32 %v1294_v56  ;;  %v1764_v56 = vld [vmem:[%s2802_s11 + $0x10] sm:$0xff] }
 0x2e8   : > { %v2249_v57 = vpop.eup %2248 }
 0x2e9   : > { %v1296_v58 = vsel %vm734_vm2, %v2249_v57, 0.0 }
 0x2ea   : > { %1297 = vadd.xlane.f32.xlu1 %v1296_v58  ;;  %v1762_v58 = vld [vmem:[%s2802_s11] sm:$0xff] }
 0x2ec   : > { %v2251_v59 = vpop.eup %2250 }
 0x2ed   : > { %v1302_v60 = vsel %vm734_vm2, %v2251_v59, 0.0 }
 0x2ee   : > { %v2253_v61 = vpop.eup %2252  ;;  %1303 = vadd.xlane.f32.xlu1 %v1302_v60 }
 0x2ef   : > { %v1299_v62 = vsel %vm734_vm2, %v2253_v61, 0.0 }
 0x2f0   : > { %1300 = vadd.xlane.f32.xlu0 %v1299_v62 }
 0x2f2   : > { %v2255_v63 = vpop.eup %2254 }
 0x2f3   : > { %v1305_v1 = vsel %vm734_vm2, %v2255_v63, 0.0 }
 0x2f4   : > { %1306 = vadd.xlane.f32.xlu0 %v1305_v1  ;;  %v2014_v1 = vld [vmem:[%s2803_s12] ss:$0 sm:$0xff] }
 0x2ff   : > { %1561 = vrot.lane.b32.xlu1 %v1316_v31, %s2383_s26  ;;  %s2388_s26 = smov 8  }
 0x30a   : > { %1477 = vrot.lane.b32.xlu0 %v1316_v31, %s2384_s18 }
 0x373   : > { %v1298_v2 = vpop.xlane.xlu1 %1297 }
 0x374   : > { %2256 = vrcp.f32 %v1298_v2 }
 0x377   : > { %v1304_v3 = vpop.xlane.xlu1 %1303 }
 0x378   : > { %2258 = vrcp.f32 %v1304_v3 }
 0x379   : > { %v1301_v5 = vpop.xlane.xlu0 %1300 }
 0x37a   : > { %2260 = vrcp.f32 %v1301_v5 }
 0x37b   : > { %v1562_v14 = vpop.permute.xlu1 %1561 }
 0x37d   : > { %v1307_v6 = vpop.xlane.xlu0 %1306 }
 0x37e   : > { %2262 = vrcp.f32 %v1307_v6 }
 0x381   : > { %v2257_v7 = vpop.eup %2256  ;;  %v1478_v9 = vpop.permute.xlu0 %1477 }
 0x382   : > { %v1312_v8 = vmul.f32 %v2257_v7, %v2249_v57  ;;  %v1763_v57 = vld [vmem:[%s2802_s11 + $0x8] sm:$0xff] }
 0x384   : > { %2120 = vmatmul.mubr.msk.f32.vlgmr.msra.gmra.mxu1 %vm734_vm2, %v1312_v8 }
 0x385   : > { %v2259_v10 = vpop.eup %2258  ;;  %2128 = vmatpush3.msra.mxu1 %v1478_v9  ;;  %2129 = vmatprep.mubr.msk.f32.mxu1 %vm2380_vm0, %v2379_v0 }
 0x386   : > { %v1314_v11 = vmul.f32 %v2259_v10, %v2251_v59  ;;  %2137 = vmatprep.subr.mxu1 %v2379_v0  ;;  %v2012_v59 = vld [vmem:[%s2801_s10] ss:$0 sm:$0xff] }
 0x387   : > { %v2261_v12 = vpop.eup %2260 }
 0x388   : > { %2130 = vmatmul.mubr.msk.f32.vlgmr.msra.gmra.mxu1 %vm734_vm2, %v1314_v11  ;;  %v1313_v13 = vmul.f32 %v2261_v12, %v2253_v61 }
 0x389   : > { %2145 = vmatprep.mubr.msk.f32.mxu1 %vm2380_vm0, %v2379_v0  ;;  %2138 = vmatpush3.msra.mxu1 %v1680_v33 }
 0x38a   : > { %2125 = vmatmul.mubr.msk.f32.vlgmr.msra.gmra.mxu0 %vm734_vm2, %v1313_v13  ;;  %2139 = vmatprep.subr.mxu1 %v2379_v0 }
 0x38b   : > { %v2263_v16 = vpop.eup %2262  ;;  %2133 = vmatpush3.msra.mxu0 %v1562_v14  ;;  %2134 = vmatprep.mubr.msk.f32.mxu0 %vm2380_vm0, %v2379_v0 }
 0x38c   : > { %v1315_v17 = vmul.f32 %v2263_v16, %v2255_v63  ;;  %2148 = vmatprep.subr.mxu0 %v2379_v0  ;;  %2140 = vmatpush3.msra.mxu1 %v1679_v34 }
 0x38d   : > { %2141 = vmatprep.subr.mxu1 %v2379_v0 }
 0x38e   : > { %2135 = vmatmul.mubr.msk.f32.vlgmr.msra.gmra.mxu0 %vm734_vm2, %v1315_v17  ;;  %2142 = vmatpush3.msra.mxu1 %v1678_v35 }
 0x38f   : > { %2164 = vmatprep.mubr.msk.f32.mxu0 %vm2380_vm0, %v2379_v0  ;;  %2143 = vmatprep.subr.mxu1 %v2379_v0 }
 0x390   : > { %2144 = vmatpush3.msra.mxu1 %v1677_v36 }
 0x444   : > { %v1386_v18 = vpop.f32.mrf.mxu1 }
 0x445   : > { %1390 = vst.msk [vmem:[#allocation4] sm:$0xff] %vm734_vm2, %v1386_v18 }
 0x446   : > { %v2121_v19 = vpop.f32.mrf.mxu1 }
 0x448   : > { %v1549_v20 = vpop.f32.mrf.mxu1 }
 0x449   : > { %1554 = vrot.lane.b32.xlu0 %v1549_v20, %s2387_s22  ;;  %v2016_v20 = vld [vmem:[%s2804_s13] ss:$0 sm:$0xff]  ;;  %s2019_s22 = sshll.u32 %s2366_s21, 7  ;;  %s2300_s21 = scalar_lea.vmem %s2299_s27, 256 }
 0x44a   : > { %v1465_v21 = vpop.f32.mrf.mxu0  ;;  %v2131_v22 = vpop.f32.mrf.mxu1  ;;  %s1898_s0 = scalar_lea.hbm %s2806_s15, %s2019_s22 }
 0x44b   : > { %1470 = vrot.lane.b32.xlu1 %v1465_v21, %s2388_s26  ;;  %v2017_v22 = vld [vmem:[%s2805_s14] ss:$0 sm:$0xff]  ;;  %s514_s26 = scalar_lea.vmem [#allocation8], %s1989_s20 }
 0x44c   : > { %v2126_v23 = vpop.f32.mrf.mxu0 }
 0x44e   : > { %v1633_v15 = vpop.f32.mrf.mxu0 }
 0x44f   : > { %1638 = vrot.lane.b32.xlu1 %v1633_v15, %s2389_s16  ;;  %s1900_s16 = sshll.u32 %s514_s26, 4  ;;  %s1901_s16 = int_to_ptr.vmem [resolvable:$true] %s1900_s16 }
 0x450   : > { %v2136_v24 = vpop.f32.mrf.mxu0  ;;  %s2294_s25 = scalar_lea.vmem %s1901_s16, 128  ;;  %p2301_p0 = scmp.lt.s32.totalorder %s1901_s16, %s2299_s27 }
 0x451   : > { %p2295_p10 = scmp.ne.s32.totalorder %s1901_s16, %s2294_s25  ;;  %p2302_p1 = scmp.lt.s32.totalorder %s2300_s21, %s2294_s25 }
 0x453   : > { %p2296_p11 = pnand %p2295_p10, %p2511_p4  ;;  %p2303_p2 = por %p2302_p1, %p2301_p0 }
 0x455   : > { %p2297_p13 = pneg %p2296_p11 }
 0x457   : > { %p2304_p3 = pnand %p2303_p2, %p2297_p13 }
 0x4bb   : > { %v1555_v26 = vpop.permute.xlu0 %1554 }
 0x4bd   : > { %v1471_v25 = vpop.permute.xlu1 %1470 }
 0x4be   : > { %1474 = vst.msk [vmem:[#allocation4] sm:$0xff] %vm1473_vm3, %v1471_v25 }
 0x4bf   : > { %1558 = vst.msk [vmem:[#allocation4] sm:$0xff] %vm1557_vm4, %v1555_v26 }
 0x4c1   : > { %v1639_v27 = vpop.permute.xlu1 %1638 }
 0x4c2   : > { %1642 = vst.msk [vmem:[#allocation4] sm:$0xff] %vm1641_vm5, %v1639_v27 }
 0x4c9   : > { %v1643_v28 = vld [vmem:[#allocation4] sm:$0xff] }
 0x4ca   : > { %v1644_v29 = vadd.f32 %v1643_v28, %v2561_v4  ;;  %v1769_v4 = vld [vmem:[%s2802_s11 + $0x38] sm:$0xff] }
 0x4cb   : > { %2149 = vmatpush3.msra.mxu0 %v1769_v4 }
 0x4cc   : > { %v1647_v30 = vsel %vm552_vm1, %v1644_v29, 0.0  ;;  %v1650_v31 = vmul.f32 %v1644_v29, %v1644_v29  ;;  %2150 = vmatprep.subr.mxu0 %v2379_v0 }
 0x4cd   : > { %1648 = vadd.xlane.f32.xlu0 %v1647_v30  ;;  %2151 = vmatpush3.msra.mxu0 %v1768_v37 }
 0x4ce   : > { %v1651_v32 = vsel %vm552_vm1, %v1650_v31, 0.0  ;;  %2152 = vmatprep.subr.mxu0 %v2379_v0 }
 0x4cf   : > { %1652 = vadd.xlane.f32.xlu1 %v1651_v32  ;;  %2153 = vmatpush3.msra.mxu0 %v1767_v38 }
 0x4d0   : > { %2154 = vmatprep.subr.mxu0 %v2379_v0 }
 0x4d1   : > { %2155 = vmatpush3.msra.mxu0 %v1766_v39 }
 0x4d2   : > { %2156 = vmatprep.subr.mxu0 %v2379_v0 }
 0x4d3   : > { %2157 = vmatpush3.msra.mxu0 %v1765_v40 }
 0x4d4   : > { %2158 = vmatprep.subr.mxu0 %v2379_v0 }
 0x4d5   : > { %2159 = vmatpush3.msra.mxu0 %v1764_v56 }
 0x4d6   : > { %2160 = vmatprep.subr.mxu0 %v2379_v0 }
 0x4d7   : > { %2161 = vmatpush3.msra.mxu0 %v1763_v57 }
 0x4d8   : > { %2162 = vmatprep.subr.mxu0 %v2379_v0 }
 0x4d9   : > { %2163 = vmatpush3.msra.mxu0 %v1762_v58 }
 0x556   : > { %v1649_v41 = vpop.xlane.xlu0 %1648 }
 0x557   : > { %v1654_v42 = vmul.f32 0.03125, %v1649_v41 }
 0x558   : > { %v1653_v43 = vpop.xlane.xlu1 %1652 }
 0x559   : > { %v1656_v44 = vmul.f32 %v1654_v42, %v1654_v42  ;;  %v1655_v45 = vmul.f32 0.03125, %v1653_v43  ;;  %v1659_v49 = vsub.f32 %v1644_v29, %v1654_v42 }
 0x55b   : > { %v1657_v46 = vsub.f32 %v1655_v45, %v1656_v44 }
 0x55d   : > { %v1658_v47 = vmax.f32 %v1657_v46, 0.0 }
 0x55f   : > { %v1660_v48 = vadd.f32 1e-05, %v1658_v47 }
 0x561   : > { %2264 = vrsqrt.f32 %v1660_v48 }
 0x56e   : > { %v2265_v50 = vpop.eup %2264 }
 0x56f   : > { %v1662_v52 = vmul.f32 %v2265_v50, %v1659_v49 }
 0x571   : > { %v1669_v54 = vmul.f32 %v2010_v51, %v1662_v52 }
 0x573   : > { %v1676_v55 = vadd.f32 %v2011_v53, %v1669_v54 }
 0x575   : > { %2146 = vmatmul.mubr.msk.f32.vlgmr.msra.gmra.mxu1 %vm552_vm1, %v1676_v55 }
 0x635   : > { %v1757_v60 = vpop.f32.mrf.mxu1 }
 0x636   : > { %v1758_v61 = vadd.f32 %v2012_v59, %v1757_v60 }
 0x637   : > { %v2147_v62 = vpop.f32.mrf.mxu1 }
 0x638   : > { %v1761_v63 = vmax.f32 %v1758_v61, 0.0 }
 0x63a   : > { %2165 = vmatmul.mubr.msk.f32.vlgmr.msra.gmra.mxu0 %vm1777_vm6, %v1761_v63 }
 0x6fa   : > { %v1847_v2 = vpop.f32.mrf.mxu0 }
 0x6fb   : > { %v1848_v3 = vadd.f32 %v2014_v1, %v1847_v2 }
 0x6fc   : > { %v2166_v5 = vpop.f32.mrf.mxu0 }
 0x6fd   : > { %v1851_v0 = vadd.f32 %v1848_v3, %v1676_v55 }
 0x6ff   : > { %v1854_v6 = vsel %vm552_vm1, %v1851_v0, 0.0  ;;  %v1857_v7 = vmul.f32 %v1851_v0, %v1851_v0 }
 0x700   : > { %1855 = vadd.xlane.f32.xlu0 %v1854_v6 }
 0x701   : > { %v1858_v8 = vsel %vm552_vm1, %v1857_v7, 0.0 }
 0x704   : > { %1859 = vadd.xlane.f32.xlu0 %v1858_v8 }
 0x789   : > { %v1856_v9 = vpop.xlane.xlu0 %1855 }
 0x78a   : > { %v1861_v10 = vmul.f32 0.03125, %v1856_v9 }
 0x78c   : > { %v1863_v12 = vmul.f32 %v1861_v10, %v1861_v10  ;;  %v1866_v18 = vsub.f32 %v1851_v0, %v1861_v10 }
 0x78d   : > { %v1860_v11 = vpop.xlane.xlu0 %1859 }
 0x78e   : > { %v1862_v13 = vmul.f32 0.03125, %v1860_v11 }
 0x790   : > { %v1864_v14 = vsub.f32 %v1862_v13, %v1863_v12 }
 0x792   : > { %v1865_v16 = vmax.f32 %v1864_v14, 0.0 }
 0x794   : > { %v1867_v17 = vadd.f32 1e-05, %v1865_v16 }
 0x796   : > { %2266 = vrsqrt.f32 %v1867_v17 }
 0x7a3   : > { %v2267_v19 = vpop.eup %2266 }
 0x7a4   : > { %v1869_v21 = vmul.f32 %v2267_v19, %v1866_v18 }
 0x7a6   : > { %v1876_v23 = vmul.f32 %v2016_v20, %v1869_v21 }
 0x7a8   : > { %v1883_v15 = vadd.f32 %v2017_v22, %v1876_v23 }
 0x7aa   : > { %1884 = vst.msk [vmem:[%s514_s26] sm:$0xff] %vm552_vm1, %v1883_v15 }
 0x7ab   : > { %2307 = shalt.err (!%p2304_p3)
}
 0x7ac   : > { %s2308_s20 = scalar_lea.hbm %s1898_s0, 128  ;;  %s2312_s22 = scalar_lea.hbm %s2806_s15, 256 }
 0x7ad   : > { %p2309_p5 = scmp.ne.s32.totalorder %s1898_s0, %s2308_s20  ;;  %p2313_p9 = scmp.lt.s32.totalorder %s1898_s0, %s2806_s15 }
 0x7ae   : > { %p2314_p12 = scmp.lt.s32.totalorder %s2312_s22, %s2308_s20 }
 0x7af   : > { %p2310_p6 = pnand %p2309_p5, %p2511_p4 }
 0x7b0   : > { %p2315_p10 = por %p2314_p12, %p2313_p9 }
 0x7b1   : > { %p2311_p7 = pneg %p2310_p6 }
 0x7b3   : > { %p2316_p11 = pnand %p2315_p10, %p2311_p7 }
 0x7b5   : > { %2319 = shalt.err (!%p2316_p11)
}
 0x7b6   : > { %2171 = dma.vmem_to_hbm [thread:$0]  (%p2511_p4), %s1901_s16, 128, %s1898_s0, %s1886_s1  }
 0x7b7 PF: > { %s2826_s18 = sld [smem:[#allocation11_spill]]  ;;  %p2183_p13 = scmp.ge.s32.totalorder %s2374_s23, 2 }
 0x7b9   : > { %p2178_p0 = pnand %p2183_p13, %p2518_p8 }
 0x7bb   : > { %p2179_p1 = pneg %p2178_p0 }
 0x7bd   : > { %s1912_s25 = sand.u32 1, %s2826_s18  }
 0x7be   : > { %s1913_s29 = scalar_lea.sflag [#allocation7], %s1912_s25 }
 0x7bf   : > { %2349 = dma.done.wait (%p2179_p1), %s1913_s29, 128  }
 0x7c0   : > { %2351 = vsyncadd (%p2179_p1), %s1913_s29, 4294967168  ;;  %s29_s23 = sadd.s32 1, %s2374_s23   ;;  %s2827_s27 = sld [smem:[#allocation12_spill]] }
 0x7c1   : > { %p26_p2 = scmp.ge.s32.totalorder %s29_s23, 4   ;;  %s2828_s20 = sld [smem:[#allocation15_spill]] }
 0x7c2   : > { %s2829_s21 = sld [smem:[#allocation13_spill]]  ;;  %s2831_s18 = smov %s2358_s19 }
 0x7c3   : > { %s2830_s22 = sld [smem:[#allocation14_spill]]  ;;  %28 = sbr.rel (!%p26_p2) target bundleno = 9 (0x9), region = 125 }
 0x7c6   : > { %s2832_s19 = smov %s2827_s27 }
 0x7c8   :  { %1918 = vsyncpa [#allocation6], 1 }
 0x7c9   :  { %1920 = vsyncpa [#allocation6 + $0x1], 1 }
 0x7ca   :  { %1921 = vsyncpa [#allocation7], 1 }
 0x7cb   :  { %1923 = vsyncpa [#allocation7 + $0x1], 1 }

// kernel: tpu_custom_call.1
= control target key start
LH: loop header
LB: loop body
LE: loop exit
PB: predicated region body
PF: predicated region fallthrough
CT: control target
= control target key end

     0   :  { %s2791_s0 = inlined_call_operand.vmem [shape: f32[2,8,32], index: 0, kind: input, shape index: {}]   ;;  %s2792_s1 = inlined_call_operand.vmem [shape: f32[32,32], index: 1, kind: input, shape index: {}]   ;;  %s2793_s2 = inlined_call_operand.vmem [shape: f32[1,32], index: 2, kind: input, shape index: {}]   ;;  %s2794_s3 = inlined_call_operand.vmem [shape: f32[32,32], index: 3, kind: input, shape index: {}]   ;;  %s2795_s4 = inlined_call_operand.vmem [shape: f32[32,1], index: 4, kind: input, shape index: {}]   ;;  %s2796_s5 = inlined_call_operand.vmem [shape: f32[32,32], index: 5, kind: input, shape index: {}]   ;;  %s2797_s6 = inlined_call_operand.vmem [shape: f32[1,32], index: 6, kind: input, shape index: {}]   ;;  %s2798_s7 = inlined_call_operand.vmem [shape: f32[1,32], index: 7, kind: input, shape index: {}]   ;;  %s2799_s8 = inlined_call_operand.vmem [shape: f32[1,32], index: 8, kind: input, shape index: {}]   ;;  %s2800_s9 = inlined_call_operand.hbm [shape: f32[32,64], index: 9, kind: input, shape index: {}]   ;;  %s2801_s10 = inlined_call_operand.vmem [shape: f32[1,64], index: 10, kind: input, shape index: {}]   ;;  %s2802_s11 = inlined_call_operand.vmem [shape: f32[64,32], index: 11, kind: input, shape index: {}]   ;;  %s2803_s12 = inlined_call_operand.vmem [shape: f32[1,32], index: 12, kind: input, shape index: {}]   ;;  %s2804_s13 = inlined_call_operand.vmem [shape: f32[1,32], index: 13, kind: input, shape index: {}]   ;;  %s2805_s14 = inlined_call_operand.vmem [shape: f32[1,32], index: 14, kind: input, shape index: {}]   ;;  %s2806_s15 = inlined_call_operand.hbm [shape: f32[2,8,32], index: 15, kind: output, shape index: {}]  }
   0x1   :  { %2811 = sst [smem:[#allocation16_spill]] %s2791_s0 }
   0x2   :  { %2812 = sst [smem:[#allocation17_spill]] %s2792_s1 }
   0x3   :  { %2813 = sst [smem:[#allocation18_spill]] %s2800_s9 }
   0x4   :  { %20 = vsyncpa [#allocation6], 0 }
   0x5   :  { %21 = vsyncpa [#allocation7], 0 }
   0x6   :  { %23 = vsyncpa [#allocation7 + $0x1], 0  ;;  %s2471_s18 = smov 0   ;;  %s2473_s19 = smov 0  }
   0x7   :  { %s2475_s20 = smov 0   ;;  %s2477_s21 = smov 0  }
   0x8   :  { %s2479_s22 = smov 0   ;;  %s2481_s23 = smov 0  }
   0x9 LB: > { %2814 = sst [smem:[#allocation11_spill]] %s2354_s18  ;;  %s1982_s24 = sadd.s32 4294967295, %s2374_s23   ;;  %s2374_s23 = sphi %s2481_s23, %s29_s23   ;;  %s2370_s22 = sphi %s2479_s22, %s2830_s22   ;;  %s2366_s21 = sphi %s2477_s21, %s2829_s21   ;;  %s2362_s20 = sphi %s2475_s20, %s2828_s20   ;;  %s2358_s19 = sphi %s2473_s19, %s2832_s19   ;;  %s2354_s18 = sphi %s2471_s18, %s2831_s18  }
   0xa   : > { %2815 = sst [smem:[#allocation12_spill]] %s2362_s20  ;;  %s1983_s25 = sadd.s32 4294967294, %s2374_s23  }
   0xb   : > { %2816 = sst [smem:[#allocation13_spill]] %s2370_s22  ;;  %s41_s26 = sadd.s32 1, %s2370_s22 }
   0xc   : > { %s370_s27 = sadd.s32 1, %s2362_s20  ;;  %p43_p0 = scmp.ge.s32.totalorder %s41_s26, 2 }
   0xd   : > { %p380_p1 = scmp.ne.s32.totalorder %s2362_s20, %s2358_s19  ;;  %p381_p2 = scmp.eq.s32.totalorder %s1982_s24, 1 }
   0xe   : > { %p386_p3 = scmp.ne.s32.totalorder %s2358_s19, %s2354_s18  ;;  %s2834_s26 = smov (%p43_p0, %s41_s26), 0 }
   0xf   : > { %2817 = sst [smem:[#allocation14_spill]] %s2834_s26  ;;  %p2511_p4 = por %p381_p2, %p380_p1 }
  0x10   : > { %p387_p5 = scmp.eq.s32.totalorder %s1983_s25, 1  ;;  %s365_s29 = ssub.s32 %s2370_s22, %s2834_s26 }
  0x11   : > { %p1984_p6 = scmp.ge.s32.totalorder %s2374_s23, 1  ;;  %p368_p7 = scmp.eq.s32.totalorder %s365_s29, 0 }
  0x12   : > { %p2518_p8 = por %p387_p5, %p386_p3  ;;  %p394_p9 = scmp.lt.s32.totalorder %s2374_s23, 3 }
  0x13   : > { %s2524_s16 = scalar_select %p368_p7, %s2362_s20, %s370_s27  }
  0x14   : > { %p2526_p10 = pnand %p1984_p6, %p394_p9  ;;  %p2530_p11 = scmp.eq.s32.totalorder %s1982_s24, 0 }
  0x15   : > { %2820 = sst [smem:[#allocation15_spill]] %s2524_s16  ;;  %s2376_s25 = smov [#allocation5]  }
  0x16   : > { %p2173_p12 = pneg %p2526_p10  ;;  %s430_s29 = sshll.u32 %s2376_s25, 4  ;;  %s431_s29 = int_to_ptr.vmem [resolvable:$true] %s430_s29 }
  0x17   : > { %s2279_s27 = scalar_lea.vmem %s431_s29, 512  ;;  %p2287_p5 = scmp.lt.s32.totalorder %s431_s29, %s431_s29 }
  0x18   : > { %p2174_p13 = pnand %p2530_p11, %p2173_p12  ;;  %p2280_p1 = scmp.ne.s32.totalorder %s431_s29, %s2279_s27 }
  0x19   : > { %p2288_p6 = scmp.lt.s32.totalorder %s2279_s27, %s2279_s27 }
  0x1a   : > { %p2270_p0 = pneg %p2174_p13 }
  0x1b   : > { %p2289_p7 = por %p2288_p6, %p2287_p5 }
  0x1c   : > { %p2282_p2 = pnand %p2280_p1, %p2270_p0 }
  0x1e   : > { %p2283_p3 = pneg %p2282_p2 }
  0x20   : > { %p2290_p9 = pnand %p2289_p7, %p2283_p3 }
  0x22   : > { %2293 = shalt.err (!%p2290_p9)
}
  0x23   : > { %s2377_s24 = smov 128   ;;  %s2378_s26 = smov 8  }
  0x24   : > { %s2823_s9 = sld [smem:[#allocation18_spill]] }
  0x26   : > { %468 = sbr.rel (%p2526_p10) target bundleno = 1975 (0x7b7), region = 80 }
  0x2a   : > { %2176 = dma.hbm_to_vmem [thread:$0]  (!%p2174_p13), %s2823_s9, 512, %s431_s29, [#allocation6], %s2377_s24, %s2377_s24, %s2378_s26  }
  0x2b   : > { %2345 = dma.done.wait (%p2530_p11), [#allocation6], 512  }
  0x2c   : > { %2347 = vsyncadd (%p2530_p11), [#allocation6], 4294966784  ;;  %p515_p12 = scmp.lt.s32.totalorder %s2366_s21, 1  ;;  %v2379_v0 = vmov 0.0   ;;  %vm2380_vm0 = vmmov 0   ;;  %v2381_v1 = vmov 0   ;;  %v844_v31 = vlaneseq }
  0x2d   : > { %2086 = vmatprep.subr.mxu0 %v2379_v0  ;;  %2094 = vmatprep.mubr.msk.f32.mxu0 %vm2380_vm0, %v2379_v0  ;;  %s2824_s0 = sld [smem:[#allocation16_spill]]  ;;  %vm552_vm1 = vcmask 261120   ;;  %v524_v5 = vld [vmem:[%s2794_s3] sm:$0xff]  ;;  %v525_v7 = vld [vmem:[%s2794_s3 + $0x8] sm:$0xff]  ;;  %v526_v10 = vld [vmem:[%s2794_s3 + $0x10] sm:$0xff]  ;;  %vm734_vm2 = vcmask 64512  }
  0x2e   : > { %s516_s22 = scalar_select %p515_p12, %s2366_s21, 1  ;;  %2246 = vset.pattern.permute.xlu1 %v2381_v1  ;;  %2247 = vset.pattern.permute.xlu0 %v2381_v1  ;;  %v528_v8 = vld [vmem:[%s2795_s4] sm:$0xff]  ;;  %v527_v11 = vld [vmem:[%s2794_s3 + $0x18] sm:$0xff]  ;;  %v655_v13 = vld [vmem:[%s2796_s5 + $0x10] sm:$0xff]  ;;  %v2385_v29 = vmov 1983009808  }
  0x2f   : > { %s2825_s1 = sld [smem:[#allocation17_spill]]  ;;  %2069 = vmatprep.mubr.msk.f32.mxu1 %vm552_vm1, %v524_v5  ;;  %534 = vperm.xlu1 %2246, %v528_v8   ;;  %v656_v12 = vld [vmem:[%s2796_s5 + $0x18] sm:$0xff]  ;;  %v1998_v14 = vld [vmem:[%s2793_s2] ss:$0 sm:$0xff]  ;;  %v654_v17 = vld [vmem:[%s2796_s5 + $0x8] sm:$0xff]  ;;  %v842_v30 = vunpack.c.l.s4 %v2385_v29  ;;  %v845_v35 = vshrl.u32 %v844_v31, 7 }
  0x30   : > { %s1990_s26 = sshll.u32 %s516_s22, 3  ;;  %v653_v22 = vld [vmem:[%s2796_s5] sm:$0xff]  ;;  %s2382_s22 = smov 120   ;;  %v530_v25 = vld [vmem:[%s2795_s4 + $0x10] sm:$0xff]  ;;  %v529_v26 = vld [vmem:[%s2795_s4 + $0x8] sm:$0xff]  ;;  %vm1473_vm3 = vcmask 130112  }
  0x31   : > { %v531_v27 = vld [vmem:[%s2795_s4 + $0x18] sm:$0xff]  ;;  %v2386_v32 = vmov 1934713408   ;;  %v843_v34 = vunpack.c.0.s8 %v842_v30  ;;  %s2389_s16 = smov 24   ;;  %vm1557_vm4 = vcmask 195712   ;;  %vm1641_vm5 = vcmask 261312  }
  0x32   : > { %v874_v33 = vunpack.c.l.s4 %v2386_v32  ;;  %vm1777_vm6 = vcmask 523264   ;;  %s512_s9 = sand.u32 1, %s2358_s19   ;;  %s2390_s29 = smov [#allocation8]  }
  0x33   : > { %s518_s18 = scalar_lea.vmem %s2824_s0, %s1990_s26  ;;  %s2383_s26 = smov 104   ;;  %v846_v39 = vsub.s32 %v843_v34, %v845_v35 }
  0x34   : > { %v2561_v4 = vld [vmem:[%s518_s18] sm:$0xff]  ;;  %s2384_s18 = smov 112   ;;  %v875_v38 = vunpack.c.0.s8 %v874_v33  ;;  %s1989_s20 = sshll.u32 %s512_s9, 3 }
  0x35   : > { %v746_v2 = vld [vmem:[%s2825_s1 + $0x18] sm:$0xff]  ;;  %v745_v3 = vld [vmem:[%s2825_s1 + $0x10] sm:$0xff]  ;;  %v744_v6 = vld [vmem:[%s2825_s1 + $0x8] sm:$0xff]  ;;  %2067 = vmatprep.subr.msk.mxu1 %vm552_vm1, %v2561_v4  ;;  %s2298_s27 = sshll.u32 %s2390_s29, 4  ;;  %s2299_s27 = int_to_ptr.vmem [resolvable:$false] %s2298_s27 }
  0x36   : > { %2087 = vmatpush3.msra.mxu0 %v746_v2  ;;  %2068 = vmatpush3.xpose.msk.msra.mxu1 %vm552_vm1, %v2561_v4  ;;  %v743_v9 = vld [vmem:[%s2825_s1] sm:$0xff]  ;;  %v878_v45 = vsub.s32 %v875_v38, %v845_v35  ;;  %s1886_s1 = scalar_lea.sflag [#allocation7], %s512_s9 }
  0x37   : > { %2088 = vmatprep.subr.mxu0 %v2379_v0  ;;  %2075 = vmatprep.subr.mxu1 %v2379_v0 }
  0x38   : > { %2089 = vmatpush3.msra.mxu0 %v745_v3 }
  0x39   : > { %2090 = vmatprep.subr.mxu0 %v2379_v0  ;;  %2070 = vmatmul.mubr.msk.f32.vlgmr.msra.gmra.mxu1 %vm552_vm1, %v525_v7 }
  0x3a   : > { %2091 = vmatpush3.msra.mxu0 %v744_v6  ;;  %2072 = vmatprep.mubr.msk.f32.mxu1 %vm552_vm1, %v526_v10 }
  0x3b   : > { %2092 = vmatprep.subr.mxu0 %v2379_v0  ;;  %2076 = vmatpush3.msra.mxu1 %v656_v12 }
  0x3c   : > { %2093 = vmatpush3.msra.mxu0 %v743_v9  ;;  %2077 = vmatprep.subr.mxu1 %v2379_v0 }
  0x3d   : > { %2095 = vmatmul.mubr.msk.f32.vlgmr.msra.gmra.mxu0 %vm552_vm1, %v2561_v4  ;;  %2102 = vmatprep.subr.mxu0 %v2379_v0 }
  0x3e   : > { %2104 = vmatprep.mubr.msk.f32.mxu0 %vm2380_vm0, %v2379_v0  ;;  %2073 = vmatmul.mubr.msk.f32.gmra.mxu1 %vm552_vm1, %v527_v11 }
  0x3f   : > { %2083 = vmatprep.mubr.msk.f32.mxu1 %vm2380_vm0, %v2379_v0  ;;  %2078 = vmatpush3.msra.mxu1 %v655_v13 }
  0x40   : > { %2079 = vmatprep.subr.mxu1 %v2379_v0 }
  0x41   : > { %2080 = vmatpush3.msra.mxu1 %v654_v17 }
  0x42   : > { %2081 = vmatprep.subr.mxu1 %v2379_v0 }
  0x43   : > { %2082 = vmatpush3.msra.mxu1 %v653_v22 }
  0x44   : > { %2097 = vmatprep.subr.mxu1 %v2379_v0  ;;  %2084 = vmatmul.mubr.msk.f32.vlgmr.msra.gmra.mxu1 %vm552_vm1, %v2561_v4 }
  0x45   : > { %2099 = vmatprep.mubr.msk.f32.mxu1 %vm2380_vm0, %v2379_v0 }
  0xaa   : > { %v535_v16 = vpop.permute.xlu1 %534 }
  0xf9   : > { %v2613_v15 = vpop.f32.mrf.mxu1 }
  0xfb   : > { %v634_v19 = vpop.f32.mrf.mxu1 }
  0xfc   : > { %v635_v21 = vadd.f32 %v634_v19, %v535_v16 }
  0xfd   : > { %v824_v18 = vpop.f32.mrf.mxu0 }
  0xfe   : > { %v825_v20 = vadd.f32 %v1998_v14, %v824_v18  ;;  %735 = vst.msk [vmem:[#allocation2] sm:$0xff] %vm734_vm2, %v635_v21  ;;  %v2074_v50 = vpop.f32.mrf.mxu1 }
  0xff   : > { %v2096_v23 = vpop.f32.mrf.mxu0 }
 0x100   : > { %v828_v24 = vmul.f32 0.35355338, %v825_v20  ;;  %v644_v59 = vpop.f32.mrf.mxu1 }
 0x102   : > { %830 = vrot.lane.b32.xlu0 %v828_v24, %s2382_s22  ;;  %836 = vrot.lane.b32.xlu1 %v828_v24, %s2383_s26 }
 0x105   : > { %v975_v28 = vld [vmem:[#allocation2] sm:$0xff] }
 0x106   : > { %833 = vrot.lane.b32.xlu0 %v828_v24, %s2384_s18  ;;  %544 = vperm.xlu1 %2246, %v530_v25  }
 0x107   : > { %2098 = vmatpush3.msra.mxu1 %v975_v28  ;;  %v730_v28 = vpop.f32.mrf.mxu1 }
 0x108   : > { %2107 = vmatprep.subr.mxu1 %v2379_v0 }
 0x109   : > { %v2085_v30 = vpop.f32.mrf.mxu1 }
 0x10a   : > { %539 = vperm.xlu0 %2247, %v529_v26   ;;  %549 = vperm.xlu1 %2246, %v531_v27   ;;  %v1996_v27 = vld [vmem:[%s2797_s6] ss:$0 sm:$0xff] }
 0x10b   : > { %v731_v29 = vadd.f32 %v1996_v27, %v730_v28 }
 0x10d   : > { %739 = vst.msk [vmem:[#allocation3] sm:$0xff] %vm552_vm1, %v731_v29 }
 0x114   : > { %v1316_v31 = vld [vmem:[#allocation3] sm:$0xff] }
 0x174   : > { %v831_v36 = vpop.permute.xlu0 %830  ;;  %v837_v37 = vpop.permute.xlu1 %836 }
 0x175   : > { %v855_v40 = vcombine.low %v831_v36, %v837_v37  ;;  %v856_v41 = vcombine.high %v831_v36, %v837_v37 }
 0x177   : > { %v863_v46 = vrot.slane %v855_v40, %v846_v39  ;;  %v870_v47 = vrot.slane %v856_v41, %v846_v39 }
 0x178   : > { %v834_v42 = vpop.permute.xlu0 %833 }
 0x179   : > { %v839_v43 = vcombine.low %v828_v24, %v834_v42  ;;  %v840_v44 = vcombine.high %v828_v24, %v834_v42 }
 0x17b   : > { %v847_v48 = vrot.slane %v839_v43, %v846_v39  ;;  %v854_v49 = vrot.slane %v840_v44, %v846_v39 }
 0x17d   : > { %v871_v51 = vcombine.low %v847_v48, %v863_v46  ;;  %v872_v52 = vcombine.high %v847_v48, %v863_v46  ;;  %v887_v53 = vcombine.low %v854_v49, %v870_v47  ;;  %v888_v54 = vcombine.high %v854_v49, %v870_v47 }
 0x17f   : > { %v879_v55 = vrot.slane %v871_v51, %v878_v45  ;;  %v886_v56 = vrot.slane %v872_v52, %v878_v45  ;;  %v895_v57 = vrot.slane %v887_v53, %v878_v45  ;;  %v902_v58 = vrot.slane %v888_v54, %v878_v45 }
 0x181   : > { %v907_v60 = vcombine.low %v879_v55, %v886_v56  ;;  %v2000_v61 = vcombine.high %v879_v55, %v886_v56  ;;  %v923_v62 = vcombine.low %v895_v57, %v902_v58  ;;  %v2001_v63 = vcombine.high %v895_v57, %v902_v58  ;;  %v545_v1 = vpop.permute.xlu1 %544 }
 0x182   : > { %v645_v2 = vadd.f32 %v644_v59, %v545_v1 }
 0x183   : > { %v914_v3 = vrot.slane %v907_v60, %v846_v39  ;;  %v922_v5 = vrot.slane %v2000_v61, %v846_v39  ;;  %v930_v6 = vrot.slane %v923_v62, %v846_v39  ;;  %v938_v7 = vrot.slane %v2001_v63, %v846_v39 }
 0x184   : > { %737 = vst.msk [vmem:[#allocation2 + $0x10] sm:$0xff] %vm734_vm2, %v645_v2 }
 0x185   : > { %v939_v8 = vcombine.low %v914_v3, %v922_v5  ;;  %v940_v9 = vcombine.high %v914_v3, %v922_v5  ;;  %v955_v10 = vcombine.low %v930_v6, %v938_v7  ;;  %v956_v11 = vcombine.high %v930_v6, %v938_v7  ;;  %v540_v12 = vpop.permute.xlu0 %539  ;;  %v550_v13 = vpop.permute.xlu1 %549 }
 0x186   : > { %v640_v14 = vadd.f32 %v2613_v15, %v540_v12  ;;  %v650_v16 = vadd.f32 %v2074_v50, %v550_v13 }
 0x187   : > { %v947_v17 = vrot.slane %v939_v8, %v878_v45  ;;  %v963_v18 = vrot.slane %v955_v10, %v878_v45  ;;  %v954_v20 = vrot.slane %v940_v9, %v878_v45  ;;  %v970_v21 = vrot.slane %v956_v11, %v878_v45 }
 0x188   : > { %736 = vst.msk [vmem:[#allocation2 + $0x8] sm:$0xff] %vm734_vm2, %v640_v14  ;;  %738 = vst.msk [vmem:[#allocation2 + $0x18] sm:$0xff] %vm734_vm2, %v650_v16 }
 0x189   : > { %v971_v19 = vcombine.low %v947_v17, %v963_v18  ;;  %v973_v23 = vcombine.low %v954_v20, %v970_v21  ;;  %v972_v24 = vcombine.high %v947_v17, %v963_v18  ;;  %v974_v26 = vcombine.high %v954_v20, %v970_v21 }
 0x18b   : > { %2100 = vmatmul.mubr.msk.f32.vlgmr.msra.gmra.mxu1 %vm734_vm2, %v971_v19  ;;  %v977_v22 = vld [vmem:[#allocation2 + $0x10] sm:$0xff] }
 0x18c   : > { %2108 = vmatpush3.msra.mxu1 %v977_v22  ;;  %2109 = vmatprep.mubr.msk.f32.mxu1 %vm2380_vm0, %v2379_v0 }
 0x18d   : > { %2117 = vmatprep.subr.mxu1 %v2379_v0 }
 0x18f   : > { %2110 = vmatmul.mubr.msk.f32.vlgmr.msra.gmra.mxu1 %vm734_vm2, %v973_v23  ;;  %v976_v15 = vld [vmem:[#allocation2 + $0x8] sm:$0xff]  ;;  %v978_v25 = vld [vmem:[#allocation2 + $0x18] sm:$0xff] }
 0x190   : > { %2103 = vmatpush3.msra.mxu0 %v976_v15  ;;  %2119 = vmatprep.mubr.msk.f32.mxu1 %vm2380_vm0, %v2379_v0 }
 0x191   : > { %2105 = vmatmul.mubr.msk.f32.vlgmr.msra.gmra.mxu0 %vm734_vm2, %v972_v24  ;;  %2112 = vmatprep.subr.mxu0 %v2379_v0 }
 0x192   : > { %2113 = vmatpush3.msra.mxu0 %v978_v25  ;;  %2114 = vmatprep.mubr.msk.f32.mxu0 %vm2380_vm0, %v2379_v0 }
 0x193   : > { %2122 = vmatprep.subr.mxu0 %v2379_v0  ;;  %2118 = vmatpush3.msra.mxu1 %v1316_v31 }
 0x194   : > { %2127 = vmatprep.subr.mxu1 %v2379_v0 }
 0x195   : > { %2115 = vmatmul.mubr.msk.f32.vlgmr.msra.gmra.mxu0 %vm734_vm2, %v974_v26 }
 0x196   : > { %2124 = vmatprep.mubr.msk.f32.mxu0 %vm2380_vm0, %v2379_v0 }
 0x24b   : > { %v1049_v32 = vpop.f32.mrf.mxu1 }
 0x24c   : > { %v1272_v33 = vsel %vm734_vm2, %v1049_v32, -inf }
 0x24d   : > { %1273 = vmax.xlane.f32.xlu0 %v1272_v33  ;;  %v2101_v34 = vpop.f32.mrf.mxu1  ;;  %v1680_v33 = vld [vmem:[#allocation5 + $0x18] sm:$0xff] }
 0x24e   : > { %v1679_v34 = vld [vmem:[#allocation5 + $0x10] sm:$0xff] }
 0x24f   : > { %v1195_v35 = vpop.f32.mrf.mxu1 }
 0x250   : > { %v1278_v36 = vsel %vm734_vm2, %v1195_v35, -inf }
 0x251   : > { %v1122_v37 = vpop.f32.mrf.mxu0  ;;  %1279 = vmax.xlane.f32.xlu0 %v1278_v36  ;;  %v2111_v38 = vpop.f32.mrf.mxu1  ;;  %v1677_v36 = vld [vmem:[#allocation5] sm:$0xff] }
 0x252   : > { %v1275_v39 = vsel %vm734_vm2, %v1122_v37, -inf  ;;  %v1767_v38 = vld [vmem:[%s2802_s11 + $0x28] sm:$0xff] }
 0x253   : > { %1276 = vmax.xlane.f32.xlu1 %v1275_v39  ;;  %v2106_v40 = vpop.f32.mrf.mxu0  ;;  %v1766_v39 = vld [vmem:[%s2802_s11 + $0x20] sm:$0xff] }
 0x254   : > { %v1765_v40 = vld [vmem:[%s2802_s11 + $0x18] sm:$0xff] }
 0x255   : > { %v1268_v41 = vpop.f32.mrf.mxu0 }
 0x256   : > { %v1281_v42 = vsel %vm734_vm2, %v1268_v41, -inf }
 0x257   : > { %v2116_v43 = vpop.f32.mrf.mxu0  ;;  %1282 = vmax.xlane.f32.xlu0 %v1281_v42 }
 0x264   : > { %1393 = vrot.lane.b32.xlu1 %v1316_v31, %s2382_s22  ;;  %s2387_s22 = smov 16  }
 0x2d6   : > { %v1274_v44 = vpop.xlane.xlu0 %1273 }
 0x2d7   : > { %v1284_v45 = vsub.f32 %v1049_v32, %v1274_v44 }
 0x2d9   : > { %v1288_v46 = vmul.f32 1.442695, %v1284_v45 }
 0x2da   : > { %v1280_v47 = vpop.xlane.xlu0 %1279 }
 0x2db   : > { %2248 = vpow2.f32 %v1288_v46  ;;  %v1286_v48 = vsub.f32 %v1195_v35, %v1280_v47  ;;  %v1678_v35 = vld [vmem:[#allocation5 + $0x8] sm:$0xff] }
 0x2dc   : > { %v1277_v49 = vpop.xlane.xlu1 %1276 }
 0x2dd   : > { %v1292_v50 = vmul.f32 1.442695, %v1286_v48  ;;  %v1285_v51 = vsub.f32 %v1122_v37, %v1277_v49  ;;  %v1768_v37 = vld [vmem:[%s2802_s11 + $0x30] sm:$0xff] }
 0x2df   : > { %2250 = vpow2.f32 %v1292_v50  ;;  %v1290_v52 = vmul.f32 1.442695, %v1285_v51  ;;  %v2010_v51 = vld [vmem:[%s2798_s7] ss:$0 sm:$0xff] }
 0x2e0   : > { %v1394_v53 = vpop.permute.xlu1 %1393  ;;  %v1283_v54 = vpop.xlane.xlu0 %1282 }
 0x2e1   : > { %2252 = vpow2.f32 %v1290_v52  ;;  %v1287_v55 = vsub.f32 %v1268_v41, %v1283_v54  ;;  %2123 = vmatpush3.msra.mxu0 %v1394_v53  ;;  %v2011_v53 = vld [vmem:[%s2799_s8] ss:$0 sm:$0xff] }
 0x2e2   : > { %2132 = vmatprep.subr.mxu0 %v2379_v0 }
 0x2e3   : > { %v1294_v56 = vmul.f32 1.442695, %v1287_v55 }
 0x2e5   : > { %2254 = vpow2.f32 %v1294_v56  ;;  %v1764_v56 = vld [vmem:[%s2802_s11 + $0x10] sm:$0xff] }
 0x2e8   : > { %v2249_v57 = vpop.eup %2248 }
 0x2e9   : > { %v1296_v58 = vsel %vm734_vm2, %v2249_v57, 0.0 }
 0x2ea   : > { %1297 = vadd.xlane.f32.xlu1 %v1296_v58  ;;  %v1762_v58 = vld [vmem:[%s2802_s11] sm:$0xff] }
 0x2ec   : > { %v2251_v59 = vpop.eup %2250 }
 0x2ed   : > { %v1302_v60 = vsel %vm734_vm2, %v2251_v59, 0.0 }
 0x2ee   : > { %v2253_v61 = vpop.eup %2252  ;;  %1303 = vadd.xlane.f32.xlu1 %v1302_v60 }
 0x2ef   : > { %v1299_v62 = vsel %vm734_vm2, %v2253_v61, 0.0 }
 0x2f0   : > { %1300 = vadd.xlane.f32.xlu0 %v1299_v62 }
 0x2f2   : > { %v2255_v63 = vpop.eup %2254 }
 0x2f3   : > { %v1305_v1 = vsel %vm734_vm2, %v2255_v63, 0.0 }
 0x2f4   : > { %1306 = vadd.xlane.f32.xlu0 %v1305_v1  ;;  %v2014_v1 = vld [vmem:[%s2803_s12] ss:$0 sm:$0xff] }
 0x2ff   : > { %1561 = vrot.lane.b32.xlu1 %v1316_v31, %s2383_s26  ;;  %s2388_s26 = smov 8  }
 0x30a   : > { %1477 = vrot.lane.b32.xlu0 %v1316_v31, %s2384_s18 }
 0x373   : > { %v1298_v2 = vpop.xlane.xlu1 %1297 }
 0x374   : > { %2256 = vrcp.f32 %v1298_v2 }
 0x377   : > { %v1304_v3 = vpop.xlane.xlu1 %1303 }
 0x378   : > { %2258 = vrcp.f32 %v1304_v3 }
 0x379   : > { %v1301_v5 = vpop.xlane.xlu0 %1300 }
 0x37a   : > { %2260 = vrcp.f32 %v1301_v5 }
 0x37b   : > { %v1562_v14 = vpop.permute.xlu1 %1561 }
 0x37d   : > { %v1307_v6 = vpop.xlane.xlu0 %1306 }
 0x37e   : > { %2262 = vrcp.f32 %v1307_v6 }
 0x381   : > { %v2257_v7 = vpop.eup %2256  ;;  %v1478_v9 = vpop.permute.xlu0 %1477 }
 0x382   : > { %v1312_v8 = vmul.f32 %v2257_v7, %v2249_v57  ;;  %v1763_v57 = vld [vmem:[%s2802_s11 + $0x8] sm:$0xff] }
 0x384   : > { %2120 = vmatmul.mubr.msk.f32.vlgmr.msra.gmra.mxu1 %vm734_vm2, %v1312_v8 }
 0x385   : > { %v2259_v10 = vpop.eup %2258  ;;  %2128 = vmatpush3.msra.mxu1 %v1478_v9  ;;  %2129 = vmatprep.mubr.msk.f32.mxu1 %vm2380_vm0, %v2379_v0 }
 0x386   : > { %v1314_v11 = vmul.f32 %v2259_v10, %v2251_v59  ;;  %2137 = vmatprep.subr.mxu1 %v2379_v0  ;;  %v2012_v59 = vld [vmem:[%s2801_s10] ss:$0 sm:$0xff] }
 0x387   : > { %v2261_v12 = vpop.eup %2260 }
 0x388   : > { %2130 = vmatmul.mubr.msk.f32.vlgmr.msra.gmra.mxu1 %vm734_vm2, %v1314_v11  ;;  %v1313_v13 = vmul.f32 %v2261_v12, %v2253_v61 }
 0x389   : > { %2145 = vmatprep.mubr.msk.f32.mxu1 %vm2380_vm0, %v2379_v0  ;;  %2138 = vmatpush3.msra.mxu1 %v1680_v33 }
 0x38a   : > { %2125 = vmatmul.mubr.msk.f32.vlgmr.msra.gmra.mxu0 %vm734_vm2, %v1313_v13  ;;  %2139 = vmatprep.subr.mxu1 %v2379_v0 }
 0x38b   : > { %v2263_v16 = vpop.eup %2262  ;;  %2133 = vmatpush3.msra.mxu0 %v1562_v14  ;;  %2134 = vmatprep.mubr.msk.f32.mxu0 %vm2380_vm0, %v2379_v0 }
 0x38c   : > { %v1315_v17 = vmul.f32 %v2263_v16, %v2255_v63  ;;  %2148 = vmatprep.subr.mxu0 %v2379_v0  ;;  %2140 = vmatpush3.msra.mxu1 %v1679_v34 }
 0x38d   : > { %2141 = vmatprep.subr.mxu1 %v2379_v0 }
 0x38e   : > { %2135 = vmatmul.mubr.msk.f32.vlgmr.msra.gmra.mxu0 %vm734_vm2, %v1315_v17  ;;  %2142 = vmatpush3.msra.mxu1 %v1678_v35 }
 0x38f   : > { %2164 = vmatprep.mubr.msk.f32.mxu0 %vm2380_vm0, %v2379_v0  ;;  %2143 = vmatprep.subr.mxu1 %v2379_v0 }
 0x390   : > { %2144 = vmatpush3.msra.mxu1 %v1677_v36 }
 0x444   : > { %v1386_v18 = vpop.f32.mrf.mxu1 }
 0x445   : > { %1390 = vst.msk [vmem:[#allocation4] sm:$0xff] %vm734_vm2, %v1386_v18 }
 0x446   : > { %v2121_v19 = vpop.f32.mrf.mxu1 }
 0x448   : > { %v1549_v20 = vpop.f32.mrf.mxu1 }
 0x449   : > { %1554 = vrot.lane.b32.xlu0 %v1549_v20, %s2387_s22  ;;  %v2016_v20 = vld [vmem:[%s2804_s13] ss:$0 sm:$0xff]  ;;  %s2019_s22 = sshll.u32 %s2366_s21, 7  ;;  %s2300_s21 = scalar_lea.vmem %s2299_s27, 256 }
 0x44a   : > { %v1465_v21 = vpop.f32.mrf.mxu0  ;;  %v2131_v22 = vpop.f32.mrf.mxu1  ;;  %s1898_s0 = scalar_lea.hbm %s2806_s15, %s2019_s22 }
 0x44b   : > { %1470 = vrot.lane.b32.xlu1 %v1465_v21, %s2388_s26  ;;  %v2017_v22 = vld [vmem:[%s2805_s14] ss:$0 sm:$0xff]  ;;  %s514_s26 = scalar_lea.vmem [#allocation8], %s1989_s20 }
 0x44c   : > { %v2126_v23 = vpop.f32.mrf.mxu0 }
 0x44e   : > { %v1633_v15 = vpop.f32.mrf.mxu0 }
 0x44f   : > { %1638 = vrot.lane.b32.xlu1 %v1633_v15, %s2389_s16  ;;  %s1900_s16 = sshll.u32 %s514_s26, 4  ;;  %s1901_s16 = int_to_ptr.vmem [resolvable:$true] %s1900_s16 }
 0x450   : > { %v2136_v24 = vpop.f32.mrf.mxu0  ;;  %s2294_s25 = scalar_lea.vmem %s1901_s16, 128  ;;  %p2301_p0 = scmp.lt.s32.totalorder %s1901_s16, %s2299_s27 }
 0x451   : > { %p2295_p10 = scmp.ne.s32.totalorder %s1901_s16, %s2294_s25  ;;  %p2302_p1 = scmp.lt.s32.totalorder %s2300_s21, %s2294_s25 }
 0x453   : > { %p2296_p11 = pnand %p2295_p10, %p2511_p4  ;;  %p2303_p2 = por %p2302_p1, %p2301_p0 }
 0x455   : > { %p2297_p13 = pneg %p2296_p11 }
 0x457   : > { %p2304_p3 = pnand %p2303_p2, %p2297_p13 }
 0x4bb   : > { %v1555_v26 = vpop.permute.xlu0 %1554 }
 0x4bd   : > { %v1471_v25 = vpop.permute.xlu1 %1470 }
 0x4be   : > { %1474 = vst.msk [vmem:[#allocation4] sm:$0xff] %vm1473_vm3, %v1471_v25 }
 0x4bf   : > { %1558 = vst.msk [vmem:[#allocation4] sm:$0xff] %vm1557_vm4, %v1555_v26 }
 0x4c1   : > { %v1639_v27 = vpop.permute.xlu1 %1638 }
 0x4c2   : > { %1642 = vst.msk [vmem:[#allocation4] sm:$0xff] %vm1641_vm5, %v1639_v27 }
 0x4c9   : > { %v1643_v28 = vld [vmem:[#allocation4] sm:$0xff] }
 0x4ca   : > { %v1644_v29 = vadd.f32 %v1643_v28, %v2561_v4  ;;  %v1769_v4 = vld [vmem:[%s2802_s11 + $0x38] sm:$0xff] }
 0x4cb   : > { %2149 = vmatpush3.msra.mxu0 %v1769_v4 }
 0x4cc   : > { %v1647_v30 = vsel %vm552_vm1, %v1644_v29, 0.0  ;;  %v1650_v31 = vmul.f32 %v1644_v29, %v1644_v29  ;;  %2150 = vmatprep.subr.mxu0 %v2379_v0 }
 0x4cd   : > { %1648 = vadd.xlane.f32.xlu0 %v1647_v30  ;;  %2151 = vmatpush3.msra.mxu0 %v1768_v37 }
 0x4ce   : > { %v1651_v32 = vsel %vm552_vm1, %v1650_v31, 0.0  ;;  %2152 = vmatprep.subr.mxu0 %v2379_v0 }
 0x4cf   : > { %1652 = vadd.xlane.f32.xlu1 %v1651_v32  ;;  %2153 = vmatpush3.msra.mxu0 %v1767_v38 }
 0x4d0   : > { %2154 = vmatprep.subr.mxu0 %v2379_v0 }
 0x4d1   : > { %2155 = vmatpush3.msra.mxu0 %v1766_v39 }
 0x4d2   : > { %2156 = vmatprep.subr.mxu0 %v2379_v0 }
 0x4d3   : > { %2157 = vmatpush3.msra.mxu0 %v1765_v40 }
 0x4d4   : > { %2158 = vmatprep.subr.mxu0 %v2379_v0 }
 0x4d5   : > { %2159 = vmatpush3.msra.mxu0 %v1764_v56 }
 0x4d6   : > { %2160 = vmatprep.subr.mxu0 %v2379_v0 }
 0x4d7   : > { %2161 = vmatpush3.msra.mxu0 %v1763_v57 }
 0x4d8   : > { %2162 = vmatprep.subr.mxu0 %v2379_v0 }
 0x4d9   : > { %2163 = vmatpush3.msra.mxu0 %v1762_v58 }
 0x556   : > { %v1649_v41 = vpop.xlane.xlu0 %1648 }
 0x557   : > { %v1654_v42 = vmul.f32 0.03125, %v1649_v41 }
 0x558   : > { %v1653_v43 = vpop.xlane.xlu1 %1652 }
 0x559   : > { %v1656_v44 = vmul.f32 %v1654_v42, %v1654_v42  ;;  %v1655_v45 = vmul.f32 0.03125, %v1653_v43  ;;  %v1659_v49 = vsub.f32 %v1644_v29, %v1654_v42 }
 0x55b   : > { %v1657_v46 = vsub.f32 %v1655_v45, %v1656_v44 }
 0x55d   : > { %v1658_v47 = vmax.f32 %v1657_v46, 0.0 }
 0x55f   : > { %v1660_v48 = vadd.f32 1e-05, %v1658_v47 }
 0x561   : > { %2264 = vrsqrt.f32 %v1660_v48 }
 0x56e   : > { %v2265_v50 = vpop.eup %2264 }
 0x56f   : > { %v1662_v52 = vmul.f32 %v2265_v50, %v1659_v49 }
 0x571   : > { %v1669_v54 = vmul.f32 %v2010_v51, %v1662_v52 }
 0x573   : > { %v1676_v55 = vadd.f32 %v2011_v53, %v1669_v54 }
 0x575   : > { %2146 = vmatmul.mubr.msk.f32.vlgmr.msra.gmra.mxu1 %vm552_vm1, %v1676_v55 }
 0x635   : > { %v1757_v60 = vpop.f32.mrf.mxu1 }
 0x636   : > { %v1758_v61 = vadd.f32 %v2012_v59, %v1757_v60 }
 0x637   : > { %v2147_v62 = vpop.f32.mrf.mxu1 }
 0x638   : > { %v1761_v63 = vmax.f32 %v1758_v61, 0.0 }
 0x63a   : > { %2165 = vmatmul.mubr.msk.f32.vlgmr.msra.gmra.mxu0 %vm1777_vm6, %v1761_v63 }
 0x6fa   : > { %v1847_v2 = vpop.f32.mrf.mxu0 }
 0x6fb   : > { %v1848_v3 = vadd.f32 %v2014_v1, %v1847_v2 }
 0x6fc   : > { %v2166_v5 = vpop.f32.mrf.mxu0 }
 0x6fd   : > { %v1851_v0 = vadd.f32 %v1848_v3, %v1676_v55 }
 0x6ff   : > { %v1854_v6 = vsel %vm552_vm1, %v1851_v0, 0.0  ;;  %v1857_v7 = vmul.f32 %v1851_v0, %v1851_v0 }
 0x700   : > { %1855 = vadd.xlane.f32.xlu0 %v1854_v6 }
 0x701   : > { %v1858_v8 = vsel %vm552_vm1, %v1857_v7, 0.0 }
 0x704   : > { %1859 = vadd.xlane.f32.xlu0 %v1858_v8 }
 0x789   : > { %v1856_v9 = vpop.xlane.xlu0 %1855 }
 0x78a   : > { %v1861_v10 = vmul.f32 0.03125, %v1856_v9 }
 0x78c   : > { %v1863_v12 = vmul.f32 %v1861_v10, %v1861_v10  ;;  %v1866_v18 = vsub.f32 %v1851_v0, %v1861_v10 }
 0x78d   : > { %v1860_v11 = vpop.xlane.xlu0 %1859 }
 0x78e   : > { %v1862_v13 = vmul.f32 0.03125, %v1860_v11 }
 0x790   : > { %v1864_v14 = vsub.f32 %v1862_v13, %v1863_v12 }
 0x792   : > { %v1865_v16 = vmax.f32 %v1864_v14, 0.0 }
 0x794   : > { %v1867_v17 = vadd.f32 1e-05, %v1865_v16 }
 0x796   : > { %2266 = vrsqrt.f32 %v1867_v17 }
 0x7a3   : > { %v2267_v19 = vpop.eup %2266 }
 0x7a4   : > { %v1869_v21 = vmul.f32 %v2267_v19, %v1866_v18 }
 0x7a6   : > { %v1876_v23 = vmul.f32 %v2016_v20, %v1869_v21 }
 0x7a8   : > { %v1883_v15 = vadd.f32 %v2017_v22, %v1876_v23 }
 0x7aa   : > { %1884 = vst.msk [vmem:[%s514_s26] sm:$0xff] %vm552_vm1, %v1883_v15 }
 0x7ab   : > { %2307 = shalt.err (!%p2304_p3)
}
 0x7ac   : > { %s2308_s20 = scalar_lea.hbm %s1898_s0, 128  ;;  %s2312_s22 = scalar_lea.hbm %s2806_s15, 256 }
 0x7ad   : > { %p2309_p5 = scmp.ne.s32.totalorder %s1898_s0, %s2308_s20  ;;  %p2313_p9 = scmp.lt.s32.totalorder %s1898_s0, %s2806_s15 }
 0x7ae   : > { %p2314_p12 = scmp.lt.s32.totalorder %s2312_s22, %s2308_s20 }
 0x7af   : > { %p2310_p6 = pnand %p2309_p5, %p2511_p4 }
 0x7b0   : > { %p2315_p10 = por %p2314_p12, %p2313_p9 }
 0x7b1   : > { %p2311_p7 = pneg %p2310_p6 }
 0x7b3   : > { %p2316_p11 = pnand %p2315_p10, %p2311_p7 }
 0x7b5   : > { %2319 = shalt.err (!%p2316_p11)
}
 0x7b6   : > { %2171 = dma.vmem_to_hbm [thread:$0]  (%p2511_p4), %s1901_s16, 128, %s1898_s0, %s1886_s1  }
 0x7b7 PF: > { %s2826_s18 = sld [smem:[#allocation11_spill]]  ;;  %p2183_p13 = scmp.ge.s32.totalorder %s2374_s23, 2 }
 0x7b9   : > { %p2178_p0 = pnand %p2183_p13, %p2518_p8 }
 0x7bb   : > { %p2179_p1 = pneg %p2178_p0 }
 0x7bd   : > { %s1912_s25 = sand.u32 1, %s2826_s18  }
 0x7be   : > { %s1913_s29 = scalar_lea.sflag [#allocation7], %s1912_s25 }
 0x7bf   : > { %2349 = dma.done.wait (%p2179_p1), %s1913_s29, 128  }
 0x7c0   : > { %2351 = vsyncadd (%p2179_p1), %s1913_s29, 4294967168  ;;  %s29_s23 = sadd.s32 1, %s2374_s23   ;;  %s2827_s27 = sld [smem:[#allocation12_spill]] }
 0x7c1   : > { %p26_p2 = scmp.ge.s32.totalorder %s29_s23, 4   ;;  %s2828_s20 = sld [smem:[#allocation15_spill]] }
 0x7c2   : > { %s2829_s21 = sld [smem:[#allocation13_spill]]  ;;  %s2831_s18 = smov %s2358_s19 }
 0x7c3   : > { %s2830_s22 = sld [smem:[#allocation14_spill]]  ;;  %28 = sbr.rel (!%p26_p2) target bundleno = 9 (0x9), region = 125 }
 0x7c6   : > { %s2832_s19 = smov %s2827_s27 }
 0x7c8   :  { %1918 = vsyncpa [#allocation6], 1 }
 0x7c9   :  { %1920 = vsyncpa [#allocation6 + $0x1], 1 }
 0x7ca   :  { %1921 = vsyncpa [#allocation7], 1 }
 0x7cb   :  { %1923 = vsyncpa [#allocation7 + $0x1], 1 }

</bundles_post_ra>
